<compile_context>
chip_gen: v7x
topology: tpu7x:2x2x1
jax: 0.10.0
libtpu: 0.0.40
codegen_flags: <defaults>
</compile_context>

<pallas_src>
import functools

import jax
import jax.numpy as jnp
from jax import lax
from jax.experimental import pallas as pl
from jax.experimental.pallas import tpu as pltpu


# ----------------------------- elementwise helpers -----------------------------

def _leaky_relu(x, alpha):
    return jnp.maximum(x, alpha * x)


def _elu(x):
    # ELU(alpha=1); clamp exp argument so the unselected branch stays finite.
    return jnp.where(x > 0, x, jnp.exp(jnp.minimum(x, 0.0)) - 1.0)


def _relation(x, adj, wgb1, wgb2, r):
    """Relation (ver=1): nb = adj@x; FiLM gamma/beta from fused (F,2F) projections; m = x + r_v - nb."""
    nb = jnp.dot(adj, x, preferred_element_type=jnp.float32)
    gb = (jnp.dot(x, wgb1, preferred_element_type=jnp.float32)
          + jnp.dot(nb, wgb2, preferred_element_type=jnp.float32))
    gb = _leaky_relu(gb, 0.2)
    f = x.shape[1]
    gamma = gb[:, :f] + 1.0
    beta = gb[:, f:]
    m = x + (gamma * r + beta) - nb
    return m


def _rownorm_lanes(m):
    """||m||_row emitted lane-dense as (1, N) via a ones-row contraction (no (N,1) masked stores)."""
    ones = jnp.ones((1, m.shape[1]), jnp.float32)
    sq = lax.dot_general(ones, m * m, (((1,), (1,)), ((), ())),
                         preferred_element_type=jnp.float32)        # (1, N)
    return jnp.sqrt(sq)


def _gat_heads(x, mi, mask, W, al_pack, ar_pack, *, nheads, alpha):
    """All attention heads at once. W: (fin, nheads*fout); al/ar packed block-diag (nheads*fout, nheads)."""
    fout = W.shape[1] // nheads
    h = jnp.dot((x + mi).astype(jnp.bfloat16), W.astype(jnp.bfloat16),
                preferred_element_type=jnp.float32)                  # (N, nheads*fout), f32 acc
    f1 = jnp.dot(h, al_pack, preferred_element_type=jnp.float32)     # (N, nheads):  a_l . h_i
    f2t = lax.dot_general(ar_pack, h, (((0,), (1,)), ((), ())),
                          preferred_element_type=jnp.float32)        # (nheads, N):  a_r . h_j
    h_bf = h.astype(jnp.bfloat16)
    outs = []
    for k in range(nheads):                                          # static unrolled head loop
        e = f1[:, k:k + 1] + f2t[k:k + 1, :]                         # e_ij = a_l.h_i + a_r.h_j
        att = jnp.exp(jnp.minimum(-e, -alpha * e))                   # exp(-leakyrelu(e)), one negate saved
        att = jnp.where(mask, att, 0.0)
        inv_rowsum = pl.reciprocal(jnp.sum(att, axis=1, keepdims=True), approx=True)
        hp = jnp.dot(att.astype(jnp.bfloat16), h_bf[:, k * fout:(k + 1) * fout],
                     preferred_element_type=jnp.float32) * inv_rowsum
        outs.append(_elu(hp))                                        # concat=True -> per-head elu
    return outs[0] if nheads == 1 else jnp.concatenate(outs, axis=1)


# ----------------------------- fused Pallas kernel -----------------------------

def tailgat_fused_kernel(x_ref, adj_ref, adjs_ref,
                         wgb1a_ref, wgb2a_ref, ra_ref, w1_ref, al1_ref, ar1_ref,
                         wgb1b_ref, wgb2b_ref, rb_ref, w2_ref, al2_ref, ar2_ref,
                         x2_ref, nm1_ref, nm2_ref,
                         *, nheads1, alpha, use_mi):
    x = x_ref[...]
    adj = adj_ref[...]
    mask = adjs_ref[...] > 0.0                                       # shared edge mask (self-loops)

    # ---- layer 1: relation + 3-head GAT + concat + outer F.elu ----
    m1 = _relation(x, adj, wgb1a_ref[...], wgb2a_ref[...], ra_ref[...])
    nm1_ref[...] = _rownorm_lanes(m1)
    mi1 = m1 if use_mi else jnp.zeros_like(m1)
    x1 = _gat_heads(x, mi1, mask, w1_ref[...], al1_ref[...], ar1_ref[...],
                    nheads=nheads1, alpha=alpha)
    x1 = _elu(x1)                                                    # outer F.elu; dropout = identity (eval)

    # ---- layer 2: TransGAT_SP (relation + 1-head GAT) ----
    m2 = _relation(x1, adj, wgb1b_ref[...], wgb2b_ref[...], rb_ref[...])
    nm2_ref[...] = _rownorm_lanes(m2)
    mi2 = m2 if use_mi else jnp.zeros_like(m2)
    x2 = _gat_heads(x1, mi2, mask, w2_ref[...], al2_ref[...], ar2_ref[...],
                    nheads=1, alpha=alpha)
    x2_ref[...] = x2


def _full_spec(shape):
    nd = len(shape)
    return pl.BlockSpec(shape, lambda i, _nd=nd: (0,) * _nd)


def tailgat_sp_forward(packed, x, adj, adj_self, head=False, *, nheads1=3, alpha=0.2):
    n = x.shape[0]
    nclass = packed["W2"].shape[1]
    args = (x, adj, adj_self,
            packed["wgb1_1"], packed["wgb2_1"], packed["r_1"],
            packed["W1"], packed["al1"], packed["ar1"],
            packed["wgb1_2"], packed["wgb2_2"], packed["r_2"],
            packed["W2"], packed["al2"], packed["ar2"])
    out_shapes = (jax.ShapeDtypeStruct((n, nclass), jnp.float32),    # x2
                  jax.ShapeDtypeStruct((1, n), jnp.float32),         # ||m1||_row, lane-dense
                  jax.ShapeDtypeStruct((1, n), jnp.float32))         # ||m2||_row, lane-dense
    kern = functools.partial(tailgat_fused_kernel, nheads1=nheads1, alpha=alpha,
                             use_mi=not head)                        # ablation == 0
    x2, nm1, nm2 = pl.pallas_call(
        kern,
        out_shape=out_shapes,
        grid=(1,),
        in_specs=[_full_spec(a.shape) for a in args],
        out_specs=tuple(_full_spec(s.shape) for s in out_shapes),
        compiler_params=pltpu.CompilerParams(dimension_semantics=("arbitrary",)),
    )(*args)
    return x2, nm1[0], nm2[0]


# ----------------------------- parameters -----------------------------

def _init_relation(key, f):
    k = jax.random.split(key, 5)
    s = 0.1
    return dict(
        wg1=s * jax.random.normal(k[0], (f, f), jnp.float32),
        wg2=s * jax.random.normal(k[1], (f, f), jnp.float32),
        wb1=s * jax.random.normal(k[2], (f, f), jnp.float32),
        wb2=s * jax.random.normal(k[3], (f, f), jnp.float32),
        r=s * jax.random.normal(k[4], (1, f), jnp.float32),
    )


def _init_gat_head(key, fin, fout):
    k = jax.random.split(key, 3)
    s = 0.2
    return dict(
        W=s * jax.random.normal(k[0], (fin, fout), jnp.float32),
        al=s * jax.random.normal(k[1], (fout, 1), jnp.float32),      # a[:out]
        ar=s * jax.random.normal(k[2], (1, fout), jnp.float32),      # a[out:]
    )


def init_params(key, nfeat, nhid1, nheads1, nclass):
    keys = jax.random.split(key, 4 + nheads1)
    params = {
        "r1": _init_relation(keys[0], nfeat),
        "gat1": [_init_gat_head(keys[1 + i], nfeat, nhid1) for i in range(nheads1)],
    }
    nfeat2 = nhid1 * nheads1
    params["r2"] = _init_relation(keys[1 + nheads1], nfeat2)
    params["gat2"] = [_init_gat_head(keys[2 + nheads1], nfeat2, nclass)]
    return params


def pack_params(params):
    """One-time packing: fuse FiLM projections, stack head weights, block-diag attention vectors."""
    def pack_rel(r):
        return (jnp.concatenate([r["wg1"], r["wb1"]], axis=1),
                jnp.concatenate([r["wg2"], r["wb2"]], axis=1),
                r["r"])

    def pack_gat(heads):
        nheads = len(heads)
        fout = heads[0]["W"].shape[1]
        W = jnp.concatenate([h["W"] for h in heads], axis=1)         # (fin, nheads*fout)
        al = jnp.zeros((nheads * fout, nheads), jnp.float32)
        ar = jnp.zeros((nheads * fout, nheads), jnp.float32)
        for k, h in enumerate(heads):
            al = al.at[k * fout:(k + 1) * fout, k].set(h["al"][:, 0])
            ar = ar.at[k * fout:(k + 1) * fout, k].set(h["ar"][0, :])
        return W, al, ar

    wgb1_1, wgb2_1, r_1 = pack_rel(params["r1"])
    W1, al1, ar1 = pack_gat(params["gat1"])
    wgb1_2, wgb2_2, r_2 = pack_rel(params["r2"])
    W2, al2, ar2 = pack_gat(params["gat2"])
    return dict(wgb1_1=wgb1_1, wgb2_1=wgb2_1, r_1=r_1, W1=W1, al1=al1, ar1=ar1,
                wgb1_2=wgb1_2, wgb2_2=wgb2_2, r_2=r_2, W2=W2, al2=al2, ar2=ar2)


# ----------------------------- main -----------------------------

if __name__ == "__main__":
    N, NFEAT, NHID1, NHEADS1, NCLASS = 64, 32, 8, 3, 8

    key = jax.random.PRNGKey(0)
    kx, ka, kp = jax.random.split(key, 3)

    x = jax.random.normal(kx, (N, NFEAT), dtype=jnp.float32)

    A = (jax.random.uniform(ka, (N, N)) < 0.15).astype(jnp.float32)
    A = jnp.maximum(A, A.T) * (1.0 - jnp.eye(N, dtype=jnp.float32))
    deg = jnp.maximum(A.sum(axis=1, keepdims=True), 1.0)
    adj = A / deg                                                    # row-normalized aggregator
    adj_self = ((A + jnp.eye(N, dtype=jnp.float32)) > 0).astype(jnp.float32)  # edge mask w/ self-loops

    params = init_params(kp, NFEAT, NHID1, NHEADS1, NCLASS)
    packed = pack_params(params)                                     # packed once, outside jit

    fwd = jax.jit(functools.partial(tailgat_sp_forward, head=False, nheads1=NHEADS1))
    x2, norm_m1, norm_m2 = fwd(packed, x, adj, adj_self)
    jax.block_until_ready((x2, norm_m1, norm_m2))

    assert x2.shape == (N, NCLASS)
    assert norm_m1.shape == (N,) and norm_m2.shape == (N,)
    assert bool(jnp.all(jnp.isfinite(x2)))
    assert bool(jnp.all(jnp.isfinite(norm_m1))) and bool(jnp.all(jnp.isfinite(norm_m2)))

    print("KERNEL_OK")
</pallas_src>

<mosaic_0001>
module attributes {stable_mosaic.version = 11 : i64} {
  func.func @tailgat_fused_kernel(%arg0: i32, %arg1: memref<64x32xf32, #tpu.memory_space<vmem>>, %arg2: memref<64x64xf32, #tpu.memory_space<vmem>>, %arg3: memref<64x64xf32, #tpu.memory_space<vmem>>, %arg4: memref<32x64xf32, #tpu.memory_space<vmem>>, %arg5: memref<32x64xf32, #tpu.memory_space<vmem>>, %arg6: memref<1x32xf32, #tpu.memory_space<vmem>>, %arg7: memref<32x24xf32, #tpu.memory_space<vmem>>, %arg8: memref<24x3xf32, #tpu.memory_space<vmem>>, %arg9: memref<24x3xf32, #tpu.memory_space<vmem>>, %arg10: memref<24x48xf32, #tpu.memory_space<vmem>>, %arg11: memref<24x48xf32, #tpu.memory_space<vmem>>, %arg12: memref<1x24xf32, #tpu.memory_space<vmem>>, %arg13: memref<24x8xf32, #tpu.memory_space<vmem>>, %arg14: memref<8x1xf32, #tpu.memory_space<vmem>>, %arg15: memref<8x1xf32, #tpu.memory_space<vmem>>, %arg16: memref<64x8xf32, #tpu.memory_space<vmem>>, %arg17: memref<1x64xf32, #tpu.memory_space<vmem>>, %arg18: memref<1x64xf32, #tpu.memory_space<vmem>>) attributes {dimension_semantics = [#tpu.dimension_semantics<arbitrary>], iteration_bounds = array<i64: 1>, scalar_prefetch = 0 : i64, scratch_operands = 0 : i64, tpu.core_type = #tpu.core_type<tc>, window_params = [{pipeline_mode = #tpu.pipeline_mode<synchronous>, transform_indices = @transform_0, window_bounds = array<i64: 64, 32>}, {pipeline_mode = #tpu.pipeline_mode<synchronous>, transform_indices = @transform_1, window_bounds = array<i64: 64, 64>}, {pipeline_mode = #tpu.pipeline_mode<synchronous>, transform_indices = @transform_2, window_bounds = array<i64: 64, 64>}, {pipeline_mode = #tpu.pipeline_mode<synchronous>, transform_indices = @transform_3, window_bounds = array<i64: 32, 64>}, {pipeline_mode = #tpu.pipeline_mode<synchronous>, transform_indices = @transform_4, window_bounds = array<i64: 32, 64>}, {pipeline_mode = #tpu.pipeline_mode<synchronous>, transform_indices = @transform_5, window_bounds = array<i64: 1, 32>}, {pipeline_mode = #tpu.pipeline_mode<synchronous>, transform_indices = @transform_6, window_bounds = array<i64: 32, 24>}, {pipeline_mode = #tpu.pipeline_mode<synchronous>, transform_indices = @transform_7, window_bounds = array<i64: 24, 3>}, {pipeline_mode = #tpu.pipeline_mode<synchronous>, transform_indices = @transform_8, window_bounds = array<i64: 24, 3>}, {pipeline_mode = #tpu.pipeline_mode<synchronous>, transform_indices = @transform_9, window_bounds = array<i64: 24, 48>}, {pipeline_mode = #tpu.pipeline_mode<synchronous>, transform_indices = @transform_10, window_bounds = array<i64: 24, 48>}, {pipeline_mode = #tpu.pipeline_mode<synchronous>, transform_indices = @transform_11, window_bounds = array<i64: 1, 24>}, {pipeline_mode = #tpu.pipeline_mode<synchronous>, transform_indices = @transform_12, window_bounds = array<i64: 24, 8>}, {pipeline_mode = #tpu.pipeline_mode<synchronous>, transform_indices = @transform_13, window_bounds = array<i64: 8, 1>}, {pipeline_mode = #tpu.pipeline_mode<synchronous>, transform_indices = @transform_14, window_bounds = array<i64: 8, 1>}, {pipeline_mode = #tpu.pipeline_mode<synchronous>, transform_indices = @transform_15, window_bounds = array<i64: 64, 8>}, {pipeline_mode = #tpu.pipeline_mode<synchronous>, transform_indices = @transform_16, window_bounds = array<i64: 1, 64>}, {pipeline_mode = #tpu.pipeline_mode<synchronous>, transform_indices = @transform_17, window_bounds = array<i64: 1, 64>}]} {
    %c0 = arith.constant 0 : index
    %c0_0 = arith.constant 0 : index
    %0 = vector.load %arg1[%c0, %c0_0] : memref<64x32xf32, #tpu.memory_space<vmem>>, vector<64x32xf32>
    %c0_1 = arith.constant 0 : index
    %c0_2 = arith.constant 0 : index
    %1 = vector.load %arg2[%c0_1, %c0_2] : memref<64x64xf32, #tpu.memory_space<vmem>>, vector<64x64xf32>
    %c0_3 = arith.constant 0 : index
    %c0_4 = arith.constant 0 : index
    %2 = vector.load %arg3[%c0_3, %c0_4] : memref<64x64xf32, #tpu.memory_space<vmem>>, vector<64x64xf32>
    %cst = arith.constant 0.000000e+00 : f32
    %3 = vector.broadcast %cst : f32 to vector<64x64xf32>
    %4 = arith.cmpf ogt, %2, %3 : vector<64x64xf32>
    %c0_5 = arith.constant 0 : index
    %c0_6 = arith.constant 0 : index
    %5 = vector.load %arg4[%c0_5, %c0_6] : memref<32x64xf32, #tpu.memory_space<vmem>>, vector<32x64xf32>
    %c0_7 = arith.constant 0 : index
    %c0_8 = arith.constant 0 : index
    %6 = vector.load %arg5[%c0_7, %c0_8] : memref<32x64xf32, #tpu.memory_space<vmem>>, vector<32x64xf32>
    %c0_9 = arith.constant 0 : index
    %c0_10 = arith.constant 0 : index
    %7 = vector.load %arg6[%c0_9, %c0_10] : memref<1x32xf32, #tpu.memory_space<vmem>>, vector<1x32xf32>
    %cst_11 = arith.constant dense<0.000000e+00> : vector<64x32xf32>
    %8 = tpu.matmul %1, %0, %cst_11 {dimension_numbers = #tpu.dot_dimension_numbers<[1], [0], [0], [1], [0, 0, 1, 1], [], []>} : vector<64x64xf32>, vector<64x32xf32>, vector<64x32xf32> -> vector<64x32xf32>
    %cst_12 = arith.constant dense<0.000000e+00> : vector<64x64xf32>
    %9 = tpu.matmul %0, %5, %cst_12 {dimension_numbers = #tpu.dot_dimension_numbers<[1], [0], [0], [1], [0, 0, 1, 1], [], []>} : vector<64x32xf32>, vector<32x64xf32>, vector<64x64xf32> -> vector<64x64xf32>
    %cst_13 = arith.constant dense<0.000000e+00> : vector<64x64xf32>
    %10 = tpu.matmul %8, %6, %cst_13 {dimension_numbers = #tpu.dot_dimension_numbers<[1], [0], [0], [1], [0, 0, 1, 1], [], []>} : vector<64x32xf32>, vector<32x64xf32>, vector<64x64xf32> -> vector<64x64xf32>
    %11 = arith.addf %9, %10 : vector<64x64xf32>
    %cst_14 = arith.constant 2.000000e-01 : f32
    %12 = vector.broadcast %cst_14 : f32 to vector<64x64xf32>
    %13 = arith.mulf %12, %11 : vector<64x64xf32>
    %14 = arith.maximumf %11, %13 : vector<64x64xf32>
    %15 = vector.extract_strided_slice %14 {offsets = [0, 0], sizes = [64, 32], strides = [1, 1]} : vector<64x64xf32> to vector<64x32xf32>
    %cst_15 = arith.constant 1.000000e+00 : f32
    %16 = vector.broadcast %cst_15 : f32 to vector<64x32xf32>
    %17 = arith.addf %15, %16 : vector<64x32xf32>
    %18 = vector.extract_strided_slice %14 {offsets = [0, 32], sizes = [64, 32], strides = [1, 1]} : vector<64x64xf32> to vector<64x32xf32>
    %19 = vector.broadcast %7 : vector<1x32xf32> to vector<64x32xf32>
    %20 = arith.mulf %17, %19 : vector<64x32xf32>
    %21 = arith.addf %20, %18 : vector<64x32xf32>
    %22 = arith.addf %0, %21 : vector<64x32xf32>
    %23 = arith.subf %22, %8 : vector<64x32xf32>
    %cst_16 = arith.constant 1.000000e+00 : f32
    %24 = vector.broadcast %cst_16 : f32 to vector<1x32xf32>
    %25 = arith.mulf %23, %23 : vector<64x32xf32>
    %cst_17 = arith.constant dense<0.000000e+00> : vector<1x64xf32>
    %26 = tpu.matmul %24, %25, %cst_17 {dimension_numbers = #tpu.dot_dimension_numbers<[1], [1], [0], [0], [0, 0, 1, 0], [], []>} : vector<1x32xf32>, vector<64x32xf32>, vector<1x64xf32> -> vector<1x64xf32>
    %27 = math.sqrt %26 : vector<1x64xf32>
    %c0_18 = arith.constant 0 : index
    %c0_19 = arith.constant 0 : index
    %28 = vector.load %arg17[%c0_18, %c0_19] : memref<1x64xf32, #tpu.memory_space<vmem>>, vector<1x64xf32>
    tpu.vector_store %arg17[%c0_18, %c0_19], %27 {strides = array<i32>} : memref<1x64xf32, #tpu.memory_space<vmem>>, vector<1x64xf32>,
    %c0_20 = arith.constant 0 : index
    %c0_21 = arith.constant 0 : index
    %29 = vector.load %arg7[%c0_20, %c0_21] : memref<32x24xf32, #tpu.memory_space<vmem>>, vector<32x24xf32>
    %c0_22 = arith.constant 0 : index
    %c0_23 = arith.constant 0 : index
    %30 = vector.load %arg8[%c0_22, %c0_23] : memref<24x3xf32, #tpu.memory_space<vmem>>, vector<24x3xf32>
    %c0_24 = arith.constant 0 : index
    %c0_25 = arith.constant 0 : index
    %31 = vector.load %arg9[%c0_24, %c0_25] : memref<24x3xf32, #tpu.memory_space<vmem>>, vector<24x3xf32>
    %32 = arith.addf %0, %23 : vector<64x32xf32>
    %33 = arith.truncf %32 : vector<64x32xf32> to vector<64x32xbf16>
    %34 = arith.truncf %29 : vector<32x24xf32> to vector<32x24xbf16>
    %cst_26 = arith.constant dense<0.000000e+00> : vector<64x24xf32>
    %35 = tpu.matmul %33, %34, %cst_26 {dimension_numbers = #tpu.dot_dimension_numbers<[1], [0], [0], [1], [0, 0, 1, 1], [], []>} : vector<64x32xbf16>, vector<32x24xbf16>, vector<64x24xf32> -> vector<64x24xf32>
    %cst_27 = arith.constant dense<0.000000e+00> : vector<64x3xf32>
    %36 = tpu.matmul %35, %30, %cst_27 {dimension_numbers = #tpu.dot_dimension_numbers<[1], [0], [0], [1], [0, 0, 1, 1], [], []>} : vector<64x24xf32>, vector<24x3xf32>, vector<64x3xf32> -> vector<64x3xf32>
    %cst_28 = arith.constant dense<0.000000e+00> : vector<3x64xf32>
    %37 = tpu.matmul %31, %35, %cst_28 {dimension_numbers = #tpu.dot_dimension_numbers<[0], [1], [1], [0], [0, 1, 1, 0], [], []>} : vector<24x3xf32>, vector<64x24xf32>, vector<3x64xf32> -> vector<3x64xf32>
    %38 = arith.truncf %35 : vector<64x24xf32> to vector<64x24xbf16>
    %39 = vector.extract_strided_slice %36 {offsets = [0, 0], sizes = [64, 1], strides = [1, 1]} : vector<64x3xf32> to vector<64x1xf32>
    %40 = vector.extract_strided_slice %37 {offsets = [0, 0], sizes = [1, 64], strides = [1, 1]} : vector<3x64xf32> to vector<1x64xf32>
    %41 = vector.broadcast %39 : vector<64x1xf32> to vector<64x64xf32>
    %42 = vector.broadcast %40 : vector<1x64xf32> to vector<64x64xf32>
    %43 = arith.addf %41, %42 : vector<64x64xf32>
    %cst_29 = arith.constant 0.000000e+00 : f32
    %44 = vector.broadcast %cst_29 : f32 to vector<64x64xf32>
    %45 = arith.subf %44, %43 : vector<64x64xf32>
    %cst_30 = arith.constant -2.000000e-01 : f32
    %46 = vector.broadcast %cst_30 : f32 to vector<64x64xf32>
    %47 = arith.mulf %46, %43 : vector<64x64xf32>
    %48 = arith.minimumf %45, %47 : vector<64x64xf32>
    %49 = math.exp %48 : vector<64x64xf32>
    %cst_31 = arith.constant 0.000000e+00 : f32
    %50 = vector.broadcast %cst_31 : f32 to vector<64x64xf32>
    %51 = arith.select %4, %49, %50 : vector<64x64xi1>, vector<64x64xf32>
    %cst_32 = arith.constant dense<0.000000e+00> : vector<64xf32>
    %52 = vector.multi_reduction <add>, %51, %cst_32 [1] : vector<64x64xf32> to vector<64xf32>
    %53 = vector.shape_cast %52 : vector<64xf32> to vector<64x1xf32>
    %54 = tpu.reciprocal %53 {approx = true} : vector<64x1xf32> -> vector<64x1xf32>
    %55 = arith.truncf %51 : vector<64x64xf32> to vector<64x64xbf16>
    %56 = vector.extract_strided_slice %38 {offsets = [0, 0], sizes = [64, 8], strides = [1, 1]} : vector<64x24xbf16> to vector<64x8xbf16>
    %cst_33 = arith.constant dense<0.000000e+00> : vector<64x8xf32>
    %57 = tpu.matmul %55, %56, %cst_33 {dimension_numbers = #tpu.dot_dimension_numbers<[1], [0], [0], [1], [0, 0, 1, 1], [], []>} : vector<64x64xbf16>, vector<64x8xbf16>, vector<64x8xf32> -> vector<64x8xf32>
    %58 = vector.broadcast %54 : vector<64x1xf32> to vector<64x8xf32>
    %59 = arith.mulf %57, %58 : vector<64x8xf32>
    %cst_34 = arith.constant 0.000000e+00 : f32
    %60 = vector.broadcast %cst_34 : f32 to vector<64x8xf32>
    %61 = arith.cmpf ogt, %59, %60 : vector<64x8xf32>
    %cst_35 = arith.constant 0.000000e+00 : f32
    %62 = vector.broadcast %cst_35 : f32 to vector<64x8xf32>
    %63 = arith.minimumf %59, %62 : vector<64x8xf32>
    %64 = math.exp %63 : vector<64x8xf32>
    %cst_36 = arith.constant 1.000000e+00 : f32
    %65 = vector.broadcast %cst_36 : f32 to vector<64x8xf32>
    %66 = arith.subf %64, %65 : vector<64x8xf32>
    %67 = arith.select %61, %59, %66 : vector<64x8xi1>, vector<64x8xf32>
    %68 = vector.extract_strided_slice %36 {offsets = [0, 1], sizes = [64, 1], strides = [1, 1]} : vector<64x3xf32> to vector<64x1xf32>
    %69 = vector.extract_strided_slice %37 {offsets = [1, 0], sizes = [1, 64], strides = [1, 1]} : vector<3x64xf32> to vector<1x64xf32>
    %70 = vector.broadcast %68 : vector<64x1xf32> to vector<64x64xf32>
    %71 = vector.broadcast %69 : vector<1x64xf32> to vector<64x64xf32>
    %72 = arith.addf %70, %71 : vector<64x64xf32>
    %cst_37 = arith.constant 0.000000e+00 : f32
    %73 = vector.broadcast %cst_37 : f32 to vector<64x64xf32>
    %74 = arith.subf %73, %72 : vector<64x64xf32>
    %cst_38 = arith.constant -2.000000e-01 : f32
    %75 = vector.broadcast %cst_38 : f32 to vector<64x64xf32>
    %76 = arith.mulf %75, %72 : vector<64x64xf32>
    %77 = arith.minimumf %74, %76 : vector<64x64xf32>
    %78 = math.exp %77 : vector<64x64xf32>
    %cst_39 = arith.constant 0.000000e+00 : f32
    %79 = vector.broadcast %cst_39 : f32 to vector<64x64xf32>
    %80 = arith.select %4, %78, %79 : vector<64x64xi1>, vector<64x64xf32>
    %cst_40 = arith.constant dense<0.000000e+00> : vector<64xf32>
    %81 = vector.multi_reduction <add>, %80, %cst_40 [1] : vector<64x64xf32> to vector<64xf32>
    %82 = vector.shape_cast %81 : vector<64xf32> to vector<64x1xf32>
    %83 = tpu.reciprocal %82 {approx = true} : vector<64x1xf32> -> vector<64x1xf32>
    %84 = arith.truncf %80 : vector<64x64xf32> to vector<64x64xbf16>
    %85 = vector.extract_strided_slice %38 {offsets = [0, 8], sizes = [64, 8], strides = [1, 1]} : vector<64x24xbf16> to vector<64x8xbf16>
    %cst_41 = arith.constant dense<0.000000e+00> : vector<64x8xf32>
    %86 = tpu.matmul %84, %85, %cst_41 {dimension_numbers = #tpu.dot_dimension_numbers<[1], [0], [0], [1], [0, 0, 1, 1], [], []>} : vector<64x64xbf16>, vector<64x8xbf16>, vector<64x8xf32> -> vector<64x8xf32>
    %87 = vector.broadcast %83 : vector<64x1xf32> to vector<64x8xf32>
    %88 = arith.mulf %86, %87 : vector<64x8xf32>
    %cst_42 = arith.constant 0.000000e+00 : f32
    %89 = vector.broadcast %cst_42 : f32 to vector<64x8xf32>
    %90 = arith.cmpf ogt, %88, %89 : vector<64x8xf32>
    %cst_43 = arith.constant 0.000000e+00 : f32
    %91 = vector.broadcast %cst_43 : f32 to vector<64x8xf32>
    %92 = arith.minimumf %88, %91 : vector<64x8xf32>
    %93 = math.exp %92 : vector<64x8xf32>
    %cst_44 = arith.constant 1.000000e+00 : f32
    %94 = vector.broadcast %cst_44 : f32 to vector<64x8xf32>
    %95 = arith.subf %93, %94 : vector<64x8xf32>
    %96 = arith.select %90, %88, %95 : vector<64x8xi1>, vector<64x8xf32>
    %97 = vector.extract_strided_slice %36 {offsets = [0, 2], sizes = [64, 1], strides = [1, 1]} : vector<64x3xf32> to vector<64x1xf32>
    %98 = vector.extract_strided_slice %37 {offsets = [2, 0], sizes = [1, 64], strides = [1, 1]} : vector<3x64xf32> to vector<1x64xf32>
    %99 = vector.broadcast %97 : vector<64x1xf32> to vector<64x64xf32>
    %100 = vector.broadcast %98 : vector<1x64xf32> to vector<64x64xf32>
    %101 = arith.addf %99, %100 : vector<64x64xf32>
    %cst_45 = arith.constant 0.000000e+00 : f32
    %102 = vector.broadcast %cst_45 : f32 to vector<64x64xf32>
    %103 = arith.subf %102, %101 : vector<64x64xf32>
    %cst_46 = arith.constant -2.000000e-01 : f32
    %104 = vector.broadcast %cst_46 : f32 to vector<64x64xf32>
    %105 = arith.mulf %104, %101 : vector<64x64xf32>
    %106 = arith.minimumf %103, %105 : vector<64x64xf32>
    %107 = math.exp %106 : vector<64x64xf32>
    %cst_47 = arith.constant 0.000000e+00 : f32
    %108 = vector.broadcast %cst_47 : f32 to vector<64x64xf32>
    %109 = arith.select %4, %107, %108 : vector<64x64xi1>, vector<64x64xf32>
    %cst_48 = arith.constant dense<0.000000e+00> : vector<64xf32>
    %110 = vector.multi_reduction <add>, %109, %cst_48 [1] : vector<64x64xf32> to vector<64xf32>
    %111 = vector.shape_cast %110 : vector<64xf32> to vector<64x1xf32>
    %112 = tpu.reciprocal %111 {approx = true} : vector<64x1xf32> -> vector<64x1xf32>
    %113 = arith.truncf %109 : vector<64x64xf32> to vector<64x64xbf16>
    %114 = vector.extract_strided_slice %38 {offsets = [0, 16], sizes = [64, 8], strides = [1, 1]} : vector<64x24xbf16> to vector<64x8xbf16>
    %cst_49 = arith.constant dense<0.000000e+00> : vector<64x8xf32>
    %115 = tpu.matmul %113, %114, %cst_49 {dimension_numbers = #tpu.dot_dimension_numbers<[1], [0], [0], [1], [0, 0, 1, 1], [], []>} : vector<64x64xbf16>, vector<64x8xbf16>, vector<64x8xf32> -> vector<64x8xf32>
    %116 = vector.broadcast %112 : vector<64x1xf32> to vector<64x8xf32>
    %117 = arith.mulf %115, %116 : vector<64x8xf32>
    %cst_50 = arith.constant 0.000000e+00 : f32
    %118 = vector.broadcast %cst_50 : f32 to vector<64x8xf32>
    %119 = arith.cmpf ogt, %117, %118 : vector<64x8xf32>
    %cst_51 = arith.constant 0.000000e+00 : f32
    %120 = vector.broadcast %cst_51 : f32 to vector<64x8xf32>
    %121 = arith.minimumf %117, %120 : vector<64x8xf32>
    %122 = math.exp %121 : vector<64x8xf32>
    %cst_52 = arith.constant 1.000000e+00 : f32
    %123 = vector.broadcast %cst_52 : f32 to vector<64x8xf32>
    %124 = arith.subf %122, %123 : vector<64x8xf32>
    %125 = arith.select %119, %117, %124 : vector<64x8xi1>, vector<64x8xf32>
    %126 = tpu.concatenate %67, %96, %125 in 1 : vector<64x8xf32>, vector<64x8xf32>, vector<64x8xf32> -> vector<64x24xf32>
    %cst_53 = arith.constant 0.000000e+00 : f32
    %127 = vector.broadcast %cst_53 : f32 to vector<64x24xf32>
    %128 = arith.cmpf ogt, %126, %127 : vector<64x24xf32>
    %cst_54 = arith.constant 0.000000e+00 : f32
    %129 = vector.broadcast %cst_54 : f32 to vector<64x24xf32>
    %130 = arith.minimumf %126, %129 : vector<64x24xf32>
    %131 = math.exp %130 : vector<64x24xf32>
    %cst_55 = arith.constant 1.000000e+00 : f32
    %132 = vector.broadcast %cst_55 : f32 to vector<64x24xf32>
    %133 = arith.subf %131, %132 : vector<64x24xf32>
    %134 = arith.select %128, %126, %133 : vector<64x24xi1>, vector<64x24xf32>
    %c0_56 = arith.constant 0 : index
    %c0_57 = arith.constant 0 : index
    %135 = vector.load %arg10[%c0_56, %c0_57] : memref<24x48xf32, #tpu.memory_space<vmem>>, vector<24x48xf32>
    %c0_58 = arith.constant 0 : index
    %c0_59 = arith.constant 0 : index
    %136 = vector.load %arg11[%c0_58, %c0_59] : memref<24x48xf32, #tpu.memory_space<vmem>>, vector<24x48xf32>
    %c0_60 = arith.constant 0 : index
    %c0_61 = arith.constant 0 : index
    %137 = vector.load %arg12[%c0_60, %c0_61] : memref<1x24xf32, #tpu.memory_space<vmem>>, vector<1x24xf32>
    %cst_62 = arith.constant dense<0.000000e+00> : vector<64x24xf32>
    %138 = tpu.matmul %1, %134, %cst_62 {dimension_numbers = #tpu.dot_dimension_numbers<[1], [0], [0], [1], [0, 0, 1, 1], [], []>} : vector<64x64xf32>, vector<64x24xf32>, vector<64x24xf32> -> vector<64x24xf32>
    %cst_63 = arith.constant dense<0.000000e+00> : vector<64x48xf32>
    %139 = tpu.matmul %134, %135, %cst_63 {dimension_numbers = #tpu.dot_dimension_numbers<[1], [0], [0], [1], [0, 0, 1, 1], [], []>} : vector<64x24xf32>, vector<24x48xf32>, vector<64x48xf32> -> vector<64x48xf32>
    %cst_64 = arith.constant dense<0.000000e+00> : vector<64x48xf32>
    %140 = tpu.matmul %138, %136, %cst_64 {dimension_numbers = #tpu.dot_dimension_numbers<[1], [0], [0], [1], [0, 0, 1, 1], [], []>} : vector<64x24xf32>, vector<24x48xf32>, vector<64x48xf32> -> vector<64x48xf32>
    %141 = arith.addf %139, %140 : vector<64x48xf32>
    %cst_65 = arith.constant 2.000000e-01 : f32
    %142 = vector.broadcast %cst_65 : f32 to vector<64x48xf32>
    %143 = arith.mulf %142, %141 : vector<64x48xf32>
    %144 = arith.maximumf %141, %143 : vector<64x48xf32>
    %145 = vector.extract_strided_slice %144 {offsets = [0, 0], sizes = [64, 24], strides = [1, 1]} : vector<64x48xf32> to vector<64x24xf32>
    %cst_66 = arith.constant 1.000000e+00 : f32
    %146 = vector.broadcast %cst_66 : f32 to vector<64x24xf32>
    %147 = arith.addf %145, %146 : vector<64x24xf32>
    %148 = vector.extract_strided_slice %144 {offsets = [0, 24], sizes = [64, 24], strides = [1, 1]} : vector<64x48xf32> to vector<64x24xf32>
    %149 = vector.broadcast %137 : vector<1x24xf32> to vector<64x24xf32>
    %150 = arith.mulf %147, %149 : vector<64x24xf32>
    %151 = arith.addf %150, %148 : vector<64x24xf32>
    %152 = arith.addf %134, %151 : vector<64x24xf32>
    %153 = arith.subf %152, %138 : vector<64x24xf32>
    %cst_67 = arith.constant 1.000000e+00 : f32
    %154 = vector.broadcast %cst_67 : f32 to vector<1x24xf32>
    %155 = arith.mulf %153, %153 : vector<64x24xf32>
    %cst_68 = arith.constant dense<0.000000e+00> : vector<1x64xf32>
    %156 = tpu.matmul %154, %155, %cst_68 {dimension_numbers = #tpu.dot_dimension_numbers<[1], [1], [0], [0], [0, 0, 1, 0], [], []>} : vector<1x24xf32>, vector<64x24xf32>, vector<1x64xf32> -> vector<1x64xf32>
    %157 = math.sqrt %156 : vector<1x64xf32>
    %c0_69 = arith.constant 0 : index
    %c0_70 = arith.constant 0 : index
    %158 = vector.load %arg18[%c0_69, %c0_70] : memref<1x64xf32, #tpu.memory_space<vmem>>, vector<1x64xf32>
    tpu.vector_store %arg18[%c0_69, %c0_70], %157 {strides = array<i32>} : memref<1x64xf32, #tpu.memory_space<vmem>>, vector<1x64xf32>,
    %c0_71 = arith.constant 0 : index
    %c0_72 = arith.constant 0 : index
    %159 = vector.load %arg13[%c0_71, %c0_72] : memref<24x8xf32, #tpu.memory_space<vmem>>, vector<24x8xf32>
    %c0_73 = arith.constant 0 : index
    %c0_74 = arith.constant 0 : index
    %160 = vector.load %arg14[%c0_73, %c0_74] : memref<8x1xf32, #tpu.memory_space<vmem>>, vector<8x1xf32>
    %c0_75 = arith.constant 0 : index
    %c0_76 = arith.constant 0 : index
    %161 = vector.load %arg15[%c0_75, %c0_76] : memref<8x1xf32, #tpu.memory_space<vmem>>, vector<8x1xf32>
    %162 = arith.addf %134, %153 : vector<64x24xf32>
    %163 = arith.truncf %162 : vector<64x24xf32> to vector<64x24xbf16>
    %164 = arith.truncf %159 : vector<24x8xf32> to vector<24x8xbf16>
    %cst_77 = arith.constant dense<0.000000e+00> : vector<64x8xf32>
    %165 = tpu.matmul %163, %164, %cst_77 {dimension_numbers = #tpu.dot_dimension_numbers<[1], [0], [0], [1], [0, 0, 1, 1], [], []>} : vector<64x24xbf16>, vector<24x8xbf16>, vector<64x8xf32> -> vector<64x8xf32>
    %cst_78 = arith.constant dense<0.000000e+00> : vector<64x1xf32>
    %166 = tpu.matmul %165, %160, %cst_78 {dimension_numbers = #tpu.dot_dimension_numbers<[1], [0], [0], [1], [0, 0, 1, 1], [], []>} : vector<64x8xf32>, vector<8x1xf32>, vector<64x1xf32> -> vector<64x1xf32>
    %cst_79 = arith.constant dense<0.000000e+00> : vector<1x64xf32>
    %167 = tpu.matmul %161, %165, %cst_79 {dimension_numbers = #tpu.dot_dimension_numbers<[0], [1], [1], [0], [0, 1, 1, 0], [], []>} : vector<8x1xf32>, vector<64x8xf32>, vector<1x64xf32> -> vector<1x64xf32>
    %168 = arith.truncf %165 : vector<64x8xf32> to vector<64x8xbf16>
    %169 = vector.broadcast %166 : vector<64x1xf32> to vector<64x64xf32>
    %170 = vector.broadcast %167 : vector<1x64xf32> to vector<64x64xf32>
    %171 = arith.addf %169, %170 : vector<64x64xf32>
    %cst_80 = arith.constant 0.000000e+00 : f32
    %172 = vector.broadcast %cst_80 : f32 to vector<64x64xf32>
    %173 = arith.subf %172, %171 : vector<64x64xf32>
    %cst_81 = arith.constant -2.000000e-01 : f32
    %174 = vector.broadcast %cst_81 : f32 to vector<64x64xf32>
    %175 = arith.mulf %174, %171 : vector<64x64xf32>
    %176 = arith.minimumf %173, %175 : vector<64x64xf32>
    %177 = math.exp %176 : vector<64x64xf32>
    %cst_82 = arith.constant 0.000000e+00 : f32
    %178 = vector.broadcast %cst_82 : f32 to vector<64x64xf32>
    %179 = arith.select %4, %177, %178 : vector<64x64xi1>, vector<64x64xf32>
    %cst_83 = arith.constant dense<0.000000e+00> : vector<64xf32>
    %180 = vector.multi_reduction <add>, %179, %cst_83 [1] : vector<64x64xf32> to vector<64xf32>
    %181 = vector.shape_cast %180 : vector<64xf32> to vector<64x1xf32>
    %182 = tpu.reciprocal %181 {approx = true} : vector<64x1xf32> -> vector<64x1xf32>
    %183 = arith.truncf %179 : vector<64x64xf32> to vector<64x64xbf16>
    %cst_84 = arith.constant dense<0.000000e+00> : vector<64x8xf32>
    %184 = tpu.matmul %183, %168, %cst_84 {dimension_numbers = #tpu.dot_dimension_numbers<[1], [0], [0], [1], [0, 0, 1, 1], [], []>} : vector<64x64xbf16>, vector<64x8xbf16>, vector<64x8xf32> -> vector<64x8xf32>
    %185 = vector.broadcast %182 : vector<64x1xf32> to vector<64x8xf32>
    %186 = arith.mulf %184, %185 : vector<64x8xf32>
    %cst_85 = arith.constant 0.000000e+00 : f32
    %187 = vector.broadcast %cst_85 : f32 to vector<64x8xf32>
    %188 = arith.cmpf ogt, %186, %187 : vector<64x8xf32>
    %cst_86 = arith.constant 0.000000e+00 : f32
    %189 = vector.broadcast %cst_86 : f32 to vector<64x8xf32>
    %190 = arith.minimumf %186, %189 : vector<64x8xf32>
    %191 = math.exp %190 : vector<64x8xf32>
    %cst_87 = arith.constant 1.000000e+00 : f32
    %192 = vector.broadcast %cst_87 : f32 to vector<64x8xf32>
    %193 = arith.subf %191, %192 : vector<64x8xf32>
    %194 = arith.select %188, %186, %193 : vector<64x8xi1>, vector<64x8xf32>
    %c0_88 = arith.constant 0 : index
    %c0_89 = arith.constant 0 : index
    %195 = vector.load %arg16[%c0_88, %c0_89] : memref<64x8xf32, #tpu.memory_space<vmem>>, vector<64x8xf32>
    tpu.vector_store %arg16[%c0_88, %c0_89], %194 {strides = array<i32>} : memref<64x8xf32, #tpu.memory_space<vmem>>, vector<64x8xf32>,
    return
  }
  func.func @transform_0(%arg0: i32) -> (i32, i32) {
    %c0_i32 = arith.constant 0 : i32
    %c0_i32_0 = arith.constant 0 : i32
    %c0_i32_1 = arith.constant 0 : i32
    return %c0_i32, %c0_i32_0 : i32, i32
  }
  func.func @transform_1(%arg0: i32) -> (i32, i32) {
    %c0_i32 = arith.constant 0 : i32
    %c0_i32_0 = arith.constant 0 : i32
    %c0_i32_1 = arith.constant 0 : i32
    return %c0_i32, %c0_i32_0 : i32, i32
  }
  func.func @transform_2(%arg0: i32) -> (i32, i32) {
    %c0_i32 = arith.constant 0 : i32
    %c0_i32_0 = arith.constant 0 : i32
    %c0_i32_1 = arith.constant 0 : i32
    return %c0_i32, %c0_i32_0 : i32, i32
  }
  func.func @transform_3(%arg0: i32) -> (i32, i32) {
    %c0_i32 = arith.constant 0 : i32
    %c0_i32_0 = arith.constant 0 : i32
    %c0_i32_1 = arith.constant 0 : i32
    return %c0_i32, %c0_i32_0 : i32, i32
  }
  func.func @transform_4(%arg0: i32) -> (i32, i32) {
    %c0_i32 = arith.constant 0 : i32
    %c0_i32_0 = arith.constant 0 : i32
    %c0_i32_1 = arith.constant 0 : i32
    return %c0_i32, %c0_i32_0 : i32, i32
  }
  func.func @transform_5(%arg0: i32) -> (i32, i32) {
    %c0_i32 = arith.constant 0 : i32
    %c0_i32_0 = arith.constant 0 : i32
    %c0_i32_1 = arith.constant 0 : i32
    return %c0_i32, %c0_i32_0 : i32, i32
  }
  func.func @transform_6(%arg0: i32) -> (i32, i32) {
    %c0_i32 = arith.constant 0 : i32
    %c0_i32_0 = arith.constant 0 : i32
    %c0_i32_1 = arith.constant 0 : i32
    return %c0_i32, %c0_i32_0 : i32, i32
  }
  func.func @transform_7(%arg0: i32) -> (i32, i32) {
    %c0_i32 = arith.constant 0 : i32
    %c0_i32_0 = arith.constant 0 : i32
    %c0_i32_1 = arith.constant 0 : i32
    return %c0_i32, %c0_i32_0 : i32, i32
  }
  func.func @transform_8(%arg0: i32) -> (i32, i32) {
    %c0_i32 = arith.constant 0 : i32
    %c0_i32_0 = arith.constant 0 : i32
    %c0_i32_1 = arith.constant 0 : i32
    return %c0_i32, %c0_i32_0 : i32, i32
  }
  func.func @transform_9(%arg0: i32) -> (i32, i32) {
    %c0_i32 = arith.constant 0 : i32
    %c0_i32_0 = arith.constant 0 : i32
    %c0_i32_1 = arith.constant 0 : i32
    return %c0_i32, %c0_i32_0 : i32, i32
  }
  func.func @transform_10(%arg0: i32) -> (i32, i32) {
    %c0_i32 = arith.constant 0 : i32
    %c0_i32_0 = arith.constant 0 : i32
    %c0_i32_1 = arith.constant 0 : i32
    return %c0_i32, %c0_i32_0 : i32, i32
  }
  func.func @transform_11(%arg0: i32) -> (i32, i32) {
    %c0_i32 = arith.constant 0 : i32
    %c0_i32_0 = arith.constant 0 : i32
    %c0_i32_1 = arith.constant 0 : i32
    return %c0_i32, %c0_i32_0 : i32, i32
  }
  func.func @transform_12(%arg0: i32) -> (i32, i32) {
    %c0_i32 = arith.constant 0 : i32
    %c0_i32_0 = arith.constant 0 : i32
    %c0_i32_1 = arith.constant 0 : i32
    return %c0_i32, %c0_i32_0 : i32, i32
  }
  func.func @transform_13(%arg0: i32) -> (i32, i32) {
    %c0_i32 = arith.constant 0 : i32
    %c0_i32_0 = arith.constant 0 : i32
    %c0_i32_1 = arith.constant 0 : i32
    return %c0_i32, %c0_i32_0 : i32, i32
  }
  func.func @transform_14(%arg0: i32) -> (i32, i32) {
    %c0_i32 = arith.constant 0 : i32
    %c0_i32_0 = arith.constant 0 : i32
    %c0_i32_1 = arith.constant 0 : i32
    return %c0_i32, %c0_i32_0 : i32, i32
  }
  func.func @transform_15(%arg0: i32) -> (i32, i32) {
    %c0_i32 = arith.constant 0 : i32
    %c0_i32_0 = arith.constant 0 : i32
    %c0_i32_1 = arith.constant 0 : i32
    return %c0_i32, %c0_i32_0 : i32, i32
  }
  func.func @transform_16(%arg0: i32) -> (i32, i32) {
    %c0_i32 = arith.constant 0 : i32
    %c0_i32_0 = arith.constant 0 : i32
    %c0_i32_1 = arith.constant 0 : i32
    return %c0_i32, %c0_i32_0 : i32, i32
  }
  func.func @transform_17(%arg0: i32) -> (i32, i32) {
    %c0_i32 = arith.constant 0 : i32
    %c0_i32_0 = arith.constant 0 : i32
    %c0_i32_1 = arith.constant 0 : i32
    return %c0_i32, %c0_i32_0 : i32, i32
  }
}

</mosaic_0001>

<bundles_post_ra>
// kernel: tailgat_sp_forward.1
= control target key start
LH: loop header
LB: loop body
LE: loop exit
PB: predicated region body
PF: predicated region fallthrough
CT: control target
= control target key end

     0   :  { %s5476_s0 = inlined_call_operand.vmem [shape: f32[64,32], index: 0, kind: input, shape index: {}]   ;;  %s5477_s1 = inlined_call_operand.vmem [shape: f32[64,64], index: 1, kind: input, shape index: {}]   ;;  %s5478_s2 = inlined_call_operand.vmem [shape: f32[64,64], index: 2, kind: input, shape index: {}]   ;;  %s5479_s3 = inlined_call_operand.vmem [shape: f32[32,64], index: 3, kind: input, shape index: {}]   ;;  %s5480_s4 = inlined_call_operand.vmem [shape: f32[32,64], index: 4, kind: input, shape index: {}]   ;;  %s5481_s5 = inlined_call_operand.vmem [shape: f32[1,32], index: 5, kind: input, shape index: {}]   ;;  %s5482_s6 = inlined_call_operand.vmem [shape: f32[32,24], index: 6, kind: input, shape index: {}]   ;;  %s5483_s7 = inlined_call_operand.vmem [shape: f32[24,3], index: 7, kind: input, shape index: {}]   ;;  %s5484_s8 = inlined_call_operand.vmem [shape: f32[24,3], index: 8, kind: input, shape index: {}]   ;;  %s5485_s9 = inlined_call_operand.vmem [shape: f32[24,48], index: 9, kind: input, shape index: {}]   ;;  %s5486_s10 = inlined_call_operand.vmem [shape: f32[24,48], index: 10, kind: input, shape index: {}]   ;;  %s5487_s11 = inlined_call_operand.vmem [shape: f32[1,24], index: 11, kind: input, shape index: {}]   ;;  %s5488_s12 = inlined_call_operand.vmem [shape: f32[24,8], index: 12, kind: input, shape index: {}]   ;;  %s5489_s13 = inlined_call_operand.vmem [shape: f32[8,1], index: 13, kind: input, shape index: {}]   ;;  %s5490_s14 = inlined_call_operand.vmem [shape: f32[8,1], index: 14, kind: input, shape index: {}]   ;;  %s5491_s15 = inlined_call_operand.vmem [shape: f32[64,8], index: 15, kind: output, shape index: {0}]   ;;  %s5492_s16 = inlined_call_operand.hbm [shape: f32[1,64], index: 16, kind: output, shape index: {1}]   ;;  %s5493_s17 = inlined_call_operand.hbm [shape: f32[1,64], index: 17, kind: output, shape index: {2}]  }
   0x1   :  { %5499 = sst [smem:[#allocation8_spill]] %s5476_s0 }
   0x2   :  { %5500 = sst [smem:[#allocation9_spill]] %s5477_s1 }
   0x3   :  { %23 = vsyncpa [#allocation3], 0  ;;  %s5501_s26 = sld [smem:[#allocation8_spill]]  ;;  %vm97_vm0 = vcmask 523264   ;;  %s5502_s24 = sld [smem:[#allocation9_spill]]  ;;  %v92_v12 = vld [vmem:[%s5480_s4] sm:$0xff] }
   0x4   :  { %v93_v13 = vld [vmem:[%s5480_s4 + $0x8] sm:$0xff]  ;;  %v94_v15 = vld [vmem:[%s5480_s4 + $0x10] sm:$0xff]  ;;  %v95_v16 = vld [vmem:[%s5480_s4 + $0x18] sm:$0xff] }
   0x5   :  { %v3894_v14 = vpack.c.bf16 %v93_v13, %v92_v12 }
   0x9   :  { %v4434_v0 = vld [vmem:[%s5501_s26] sm:$0xff]  ;;  %v4439_v1 = vld [vmem:[%s5501_s26 + $0x8] sm:$0xff]  ;;  %v4444_v2 = vld [vmem:[%s5501_s26 + $0x10] sm:$0xff] }
   0xa   :  { %v3878_v3 = vpack.c.bf16 %v4439_v1, %v4434_v0  ;;  %v4451_v4 = vld [vmem:[%s5501_s26 + $0x18] sm:$0xff]  ;;  %v4458_v6 = vld [vmem:[%s5501_s26 + $0x20] sm:$0xff]  ;;  %v4463_v7 = vld [vmem:[%s5501_s26 + $0x28] sm:$0xff] }
   0xb   :  { %v3882_v5 = vpack.c.bf16 %v4451_v4, %v4444_v2  ;;  %v64_v8 = vld [vmem:[%s5502_s24] sm:$0xff]  ;;  %v4472_v9 = vld [vmem:[%s5501_s26 + $0x30] sm:$0xff]  ;;  %v3886_v10 = vpack.c.bf16 %v4463_v7, %v4458_v6  ;;  %v4479_v11 = vld [vmem:[%s5501_s26 + $0x38] sm:$0xff] }
   0xc   :  { %3879 = vmatprep.subr.bf16.mxu0 %v3878_v3  ;;  %3566 = vmatprep.mubr.msk.f32.mxu0 %vm97_vm0, %v64_v8 }
   0xd   :  { %3881 = vmatpush3.bf16.msra.mxu0 %v3878_v3 }
   0xe   :  { %3883 = vmatprep.subr.bf16.mxu0 %v3882_v5 }
   0xf   :  { %24 = vsyncpa [#allocation5], 0  ;;  %v3898_v17 = vpack.c.bf16 %v95_v16, %v94_v15  ;;  %3895 = vmatprep.subr.bf16.mxu1 %v3894_v14  ;;  %v3890_v18 = vpack.c.bf16 %v4479_v11, %v4472_v9  ;;  %v65_v19 = vld [vmem:[%s5502_s24 + $0x8] sm:$0xff]  ;;  %v66_v20 = vld [vmem:[%s5502_s24 + $0x10] sm:$0xff]  ;;  %vm227_vm1 = vcmask 261120   ;;  %s4326_s22 = smov 96  }
  0x10   :  { %3897 = vmatpush3.bf16.msra.mxu1 %v3894_v14  ;;  %v67_v21 = vld [vmem:[%s5502_s24 + $0x18] sm:$0xff]  ;;  %v68_v22 = vld [vmem:[%s5502_s24 + $0x20] sm:$0xff]  ;;  %v69_v23 = vld [vmem:[%s5502_s24 + $0x28] sm:$0xff]  ;;  %v4327_v56 = vmov 0.0|0.0   ;;  %vm4328_vm2 = vmmov 0   ;;  %v4329_v15 = vmov 0.0  }
  0x11   :  { %3885 = vmatpush3.bf16.msra.mxu0 %v3882_v5  ;;  %3899 = vmatprep.subr.bf16.mxu1 %v3898_v17  ;;  %v70_v24 = vld [vmem:[%s5502_s24 + $0x30] sm:$0xff]  ;;  %v71_v25 = vld [vmem:[%s5502_s24 + $0x38] sm:$0xff]  ;;  %v88_v26 = vld [vmem:[%s5479_s3] sm:$0xff]  ;;  %vm795_vm4 = vcmask 195584   ;;  %vm692_vm8 = vcmask 516096   ;;  %s4336_s19 = smov 16  }
  0x12   :  { %3887 = vmatprep.subr.bf16.mxu0 %v3886_v10  ;;  %v89_v27 = vld [vmem:[%s5479_s3 + $0x8] sm:$0xff]  ;;  %v90_v29 = vld [vmem:[%s5479_s3 + $0x10] sm:$0xff]  ;;  %v91_v30 = vld [vmem:[%s5479_s3 + $0x18] sm:$0xff]  ;;  %s4340_s28 = smov [#allocation4]  }
  0x13   :  { %v3902_v28 = vpack.c.bf16 %v89_v27, %v88_v26  ;;  %v3906_v33 = vpack.c.bf16 %v91_v30, %v90_v29  ;;  %v694_v40 = vld [vmem:[%s5482_s6] sm:$0xff]  ;;  %v695_v41 = vld [vmem:[%s5482_s6 + $0x8] sm:$0xff]  ;;  %v696_v46 = vld [vmem:[%s5482_s6 + $0x10] sm:$0xff]  ;;  %s3192_s29 = sshll.u32 %s4340_s28, 4  ;;  %s3193_s29 = int_to_ptr.vmem [resolvable:$true] %s3192_s29 }
  0x14   :  { %3901 = vmatpush3.bf16.msra.mxu1 %v3898_v17  ;;  %v716_v43 = vpack.c.bf16 %v695_v41, %v694_v40  ;;  %v697_v47 = vld [vmem:[%s5482_s6 + $0x18] sm:$0xff]  ;;  %v3230_v17 = vld [vmem:[%s5481_s5] ss:$0 sm:$0xff]  ;;  %vm4615_vm3 = vmpackc.low %vm227_vm1, %vm227_vm1 }
  0x15   :  { %3889 = vmatpush3.bf16.msra.mxu0 %v3886_v10  ;;  %3903 = vmatprep.subr.bf16.mxu1 %v3902_v28  ;;  %v717_v51 = vpack.c.bf16 %v697_v47, %v696_v46  ;;  %vm4675_vm5 = vmpackc.low %vm795_vm4, %vm795_vm4 }
  0x16   :  { %3891 = vmatprep.subr.bf16.mxu0 %v3890_v18 }
  0x19   :  { %3893 = vmatpush3.bf16.msra.mxu0 %v3890_v18 }
  0x1a   :  { %3910 = vmatprep.subr.bf16.mxu0 %v4327_v56 }
  0x1c   :  { %3567 = vmatmul.mubr.msk.f32.vlgmr.msra.gmra.mrb[0].mxu0 %vm97_vm0, %v65_v19 }
  0x1d   :  { %3569 = vmatprep.mubr.msk.f32.mxu0 %vm97_vm0, %v66_v20 }
  0x20   :  { %3570 = vmatmul.mubr.msk.f32.gmra.mrb[2].mxu0 %vm97_vm0, %v67_v21 }
  0x21   :  { %3572 = vmatprep.mubr.msk.f32.mxu0 %vm97_vm0, %v68_v22 }
  0x24   :  { %3573 = vmatmul.mubr.msk.f32.gmra.mrb[4].mxu0 %vm97_vm0, %v69_v23 }
  0x25   :  { %3575 = vmatprep.mubr.msk.f32.mxu0 %vm97_vm0, %v70_v24 }
  0x28   :  { %3576 = vmatmul.mubr.msk.f32.gmra.mrb[6].mxu0 %vm97_vm0, %v71_v25 }
  0x29   :  { %3634 = vmatprep.mubr.msk.f32.mxu0 %vm4328_vm2, %v4329_v15 }
  0xef   :  { %v4535_v31 = vpop.f32.mrb[0].mxu0 }
  0xf0   :  { %v4537_v32 = vpop.f32.mrb[1].mxu0 }
  0xf1   :  { %3586 = vmatprep.mubr.msk.f32.mxu1 %vm227_vm1, %v4537_v32 }
  0xf2   :  { %3587 = vmatmul.mubr.msk.f32.vlgmr.msra.gmra.mrb[0].mxu1 %vm227_vm1, %v4535_v31 }
  0xf3   :  { %v4543_v34 = vpop.f32.mrb[2].mxu0  ;;  %3905 = vmatpush3.bf16.msra.mxu1 %v3902_v28 }
  0xf4   :  { %v4545_v35 = vpop.f32.mrb[3].mxu0  ;;  %3907 = vmatprep.subr.bf16.mxu1 %v3906_v33 }
  0xf5   :  { %3589 = vmatprep.mubr.msk.f32.mxu1 %vm227_vm1, %v4545_v35 }
  0xf6   :  { %3590 = vmatmul.mubr.msk.f32.gmra.mrb[2].mxu1 %vm227_vm1, %v4543_v34 }
  0xf7   :  { %v4551_v36 = vpop.f32.mrb[4].mxu0  ;;  %3909 = vmatpush3.bf16.msra.mxu1 %v3906_v33 }
  0xf8   :  { %v4553_v37 = vpop.f32.mrb[5].mxu0  ;;  %3637 = vmatprep.subr.bf16.mxu1 %v716_v43 }
  0xf9   :  { %3592 = vmatprep.mubr.msk.f32.mxu1 %vm227_vm1, %v4553_v37 }
  0xfa   :  { %3593 = vmatmul.mubr.msk.f32.gmra.mrb[4].mxu1 %vm227_vm1, %v4551_v36 }
  0xfb   :  { %v4559_v38 = vpop.f32.mrb[6].mxu0 }
  0xfc   :  { %v4561_v39 = vpop.f32.mrb[7].mxu0 }
  0xfd   :  { %3595 = vmatprep.mubr.msk.f32.mxu1 %vm227_vm1, %v4561_v39 }
  0xfe   :  { %3596 = vmatmul.mubr.msk.f32.gmra.mrb[6].mxu1 %vm227_vm1, %v4559_v38 }
  0xff   :  { %3606 = vmatprep.mubr.msk.f32.mxu1 %vm227_vm1, %v4434_v0 }
 0x102   :  { %3607 = vmatmul.mubr.msk.f32.vlgmr.msra.gmra.mrb[0].mxu1 %vm227_vm1, %v4439_v1 }
 0x103   :  { %3609 = vmatprep.mubr.msk.f32.mxu1 %vm227_vm1, %v4444_v2  ;;  %3638 = vmatpush3.bf16.msra.mxu1 %v716_v43 }
 0x104   :  { %3639 = vmatprep.subr.bf16.mxu1 %v717_v51 }
 0x106   :  { %3610 = vmatmul.mubr.msk.f32.gmra.mrb[2].mxu1 %vm227_vm1, %v4451_v4 }
 0x107   :  { %3612 = vmatprep.mubr.msk.f32.mxu1 %vm227_vm1, %v4458_v6  ;;  %3640 = vmatpush3.bf16.msra.mxu1 %v717_v51 }
 0x108   :  { %3930 = vmatprep.subr.bf16.mxu1 %v4327_v56 }
 0x10a   :  { %3613 = vmatmul.mubr.msk.f32.gmra.mrb[4].mxu1 %vm227_vm1, %v4463_v7 }
 0x10b   :  { %3615 = vmatprep.mubr.msk.f32.mxu1 %vm227_vm1, %v4472_v9 }
 0x10e   :  { %3616 = vmatmul.mubr.msk.f32.gmra.mrb[6].mxu1 %vm227_vm1, %v4479_v11 }
 0x1d5   :  { %v3608_v42 = vpop.f32.mrb[0].mxu1 }
 0x1d6   :  { %v447_v44 = vpop.f32.mrb[1].mxu1  ;;  %v487_v48 = vmul.f32 0.2, %v3608_v42 }
 0x1d7   :  { %v486_v45 = vmul.f32 0.2, %v447_v44 }
 0x1d8   :  { %v495_v57 = vmax.f32 %v3608_v42, %v487_v48 }
 0x1d9   :  { %v3611_v49 = vpop.f32.mrb[2].mxu1  ;;  %v494_v50 = vmax.f32 %v447_v44, %v486_v45 }
 0x1da   :  { %v489_v52 = vmul.f32 0.2, %v3611_v49  ;;  %v457_v53 = vpop.f32.mrb[3].mxu1  ;;  %v503_v19 = vadd.f32 1.0, %v495_v57 }
 0x1db   :  { %532 = vrot.lane.b32.xlu0 %v494_v50, %s4326_s22  ;;  %v488_v54 = vmul.f32 0.2, %v457_v53  ;;  %v502_v16 = vadd.f32 1.0, %v494_v50 }
 0x1dc   :  { %v497_v55 = vmax.f32 %v3611_v49, %v489_v52  ;;  %v517_v28 = vmul.f32 %v3230_v17, %v503_v19 }
 0x1dd   :  { %v3614_v58 = vpop.f32.mrb[4].mxu1  ;;  %v496_v61 = vmax.f32 %v457_v53, %v488_v54  ;;  %v516_v20 = vmul.f32 %v3230_v17, %v502_v16 }
 0x1de   :  { %538 = vrot.lane.b32.xlu1 %v497_v55, %s4326_s22  ;;  %v467_v59 = vpop.f32.mrb[5].mxu1  ;;  %v491_v62 = vmul.f32 0.2, %v3614_v58  ;;  %v505_v18 = vadd.f32 1.0, %v497_v55 }
 0x1df   :  { %v490_v60 = vmul.f32 0.2, %v467_v59  ;;  %534 = vrot.lane.b32.xlu0 %v495_v57, %s4326_s22  ;;  %v504_v23 = vadd.f32 1.0, %v496_v61 }
 0x1e0   :  { %v499_v10 = vmax.f32 %v3614_v58, %v491_v62  ;;  %v519_v24 = vmul.f32 %v3230_v17, %v505_v18 }
 0x1e1   :  { %v498_v63 = vmax.f32 %v467_v59, %v490_v60  ;;  %v3617_v3 = vpop.f32.mrb[6].mxu1  ;;  %v518_v44 = vmul.f32 %v3230_v17, %v504_v23 }
 0x1e2   :  { %536 = vrot.lane.b32.xlu1 %v496_v61, %s4326_s22  ;;  %v477_v5 = vpop.f32.mrb[7].mxu1  ;;  %v493_v12 = vmul.f32 0.2, %v3617_v3  ;;  %v507_v41 = vadd.f32 1.0, %v499_v10 }
 0x1e3   :  { %v492_v8 = vmul.f32 0.2, %v477_v5  ;;  %540 = vrot.lane.b32.xlu0 %v498_v63, %s4326_s22  ;;  %v506_v25 = vadd.f32 1.0, %v498_v63 }
 0x1e4   :  { %v501_v14 = vmax.f32 %v3617_v3, %v493_v12  ;;  %v521_v55 = vmul.f32 %v3230_v17, %v507_v41  ;;  %v700_v41 = vld [vmem:[%s5483_s7 + $0x10] sm:$0xff] }
 0x1e5   :  { %v500_v13 = vmax.f32 %v477_v5, %v492_v8  ;;  %v520_v47 = vmul.f32 %v3230_v17, %v506_v25 }
 0x1e6   :  { %542 = vrot.lane.b32.xlu1 %v499_v10, %s4326_s22  ;;  %v509_v48 = vadd.f32 1.0, %v501_v14 }
 0x1e7   :  { %544 = vrot.lane.b32.xlu0 %v500_v13, %s4326_s22  ;;  %v508_v42 = vadd.f32 1.0, %v500_v13 }
 0x1e8   :  { %v523_v8 = vmul.f32 %v3230_v17, %v509_v48 }
 0x1e9   :  { %v522_v57 = vmul.f32 %v3230_v17, %v508_v42  ;;  %v702_v42 = vld [vmem:[%s5484_s8 + $0x8] sm:$0xff] }
 0x1ea   :  { %546 = vrot.lane.b32.xlu1 %v501_v14, %s4326_s22 }
 0x24d   :  { %v533_v21 = vpop.permute.xlu0 %532 }
 0x24e   :  { %v556_v22 = vadd.f32 %v533_v21, %v516_v20 }
 0x250   :  { %v564_v26 = vadd.f32 %v556_v22, %v4434_v0  ;;  %v539_v27 = vpop.permute.xlu1 %538 }
 0x251   :  { %v559_v29 = vadd.f32 %v539_v27, %v519_v24  ;;  %v535_v30 = vpop.permute.xlu0 %534 }
 0x252   :  { %v572_v33 = vsub.f32 %v564_v26, %v4537_v32  ;;  %v557_v40 = vadd.f32 %v535_v30, %v517_v28 }
 0x253   :  { %v567_v43 = vadd.f32 %v559_v29, %v4451_v4 }
 0x254   :  { %v565_v45 = vadd.f32 %v557_v40, %v4439_v1  ;;  %v537_v46 = vpop.permute.xlu1 %536  ;;  %v580_v54 = vmul.f32 %v572_v33, %v572_v33  ;;  %v704_v58 = vadd.f32 %v572_v33, %v4434_v0  ;;  %v701_v40 = vld [vmem:[%s5484_s8] sm:$0xff] }
 0x255   :  { %v575_v49 = vsub.f32 %v567_v43, %v4543_v34  ;;  %v558_v50 = vadd.f32 %v537_v46, %v518_v44  ;;  %v541_v51 = vpop.permute.xlu0 %540  ;;  %925 = vxpose.xlu0.b32.start [1/3] (short) (narrow) %v701_v40, 8  ;;  %v703_v43 = vld [vmem:[%s5484_s8 + $0x10] sm:$0xff]  ;;  %v4331_v44 = vmov 0   ;;  %s4335_s8 = smov 112  }
 0x256   :  { %v573_v52 = vsub.f32 %v565_v45, %v4535_v31  ;;  %v560_v53 = vadd.f32 %v541_v51, %v520_v47  ;;  %4034 = vset.pattern.permute.xlu1 %v4331_v44 }
 0x257   :  { %v566_v32 = vadd.f32 %v558_v50, %v4444_v2  ;;  %v583_v63 = vmul.f32 %v575_v49, %v575_v49  ;;  %v707_v13 = vadd.f32 %v575_v49, %v4451_v4 }
 0x258   :  { %v581_v59 = vmul.f32 %v573_v52, %v573_v52  ;;  %v705_v60 = vadd.f32 %v573_v52, %v4439_v1  ;;  %v568_v61 = vadd.f32 %v560_v53, %v4458_v6  ;;  %v543_v62 = vpop.permute.xlu1 %542 }
 0x259   :  { %v574_v34 = vsub.f32 %v566_v32, %v4545_v35  ;;  %v561_v3 = vadd.f32 %v543_v62, %v521_v55  ;;  %v545_v5 = vpop.permute.xlu0 %544  ;;  %926 = vxpose.xlu0.b32.cont [2/3] (short) (narrow) %v702_v42, 8  ;;  %v4332_v62 = vmov 1  }
 0x25a   :  { %v3911_v10 = vpack.c.bf16 %v581_v59, %v580_v54  ;;  %v576_v0 = vsub.f32 %v568_v61, %v4553_v37  ;;  %v562_v12 = vadd.f32 %v545_v5, %v522_v57  ;;  %v712_v1 = vpack.c.bf16 %v705_v60, %v704_v58 }
 0x25b   :  { %v582_v14 = vmul.f32 %v574_v34, %v574_v34  ;;  %v706_v16 = vadd.f32 %v574_v34, %v4444_v2  ;;  %v569_v35 = vadd.f32 %v561_v3, %v4463_v7 }
 0x25c   :  { %v570_v18 = vadd.f32 %v562_v12, %v4472_v9  ;;  %3913 = vmatpush3.bf16.xpose.msk.msra.mxu0 %vm4615_vm3, %v3911_v10  ;;  %3641 = vmatprep.mubr.msk.bf16.mxu1 %vm227_vm1, %v712_v1  ;;  %v547_v17 = vpop.permute.xlu1 %546  ;;  %v584_v4 = vmul.f32 %v576_v0, %v576_v0  ;;  %v708_v22 = vadd.f32 %v576_v0, %v4458_v6 }
 0x25d   :  { %v3915_v19 = vpack.c.bf16 %v583_v63, %v582_v14  ;;  %v713_v20 = vpack.c.bf16 %v707_v13, %v706_v16  ;;  %v577_v37 = vsub.f32 %v569_v35, %v4551_v36  ;;  %v563_v21 = vadd.f32 %v547_v17, %v523_v8  ;;  %3914 = vmatprep.subr.bf16.mxu0 %v4327_v56 }
 0x25e   :  { %v578_v2 = vsub.f32 %v570_v18, %v4561_v39  ;;  %v4330_v39 = vmov 1.0   ;;  %927 = vxpose.xlu0.b32.end [3/3] (short) (narrow) %v703_v43, 8  ;;  %v4333_v13 = vmov 2   ;;  %v1074_v17 = vlaneseq }
 0x25f   :  { %v585_v23 = vmul.f32 %v577_v37, %v577_v37  ;;  %v709_v24 = vadd.f32 %v577_v37, %v4463_v7  ;;  %v571_v25 = vadd.f32 %v563_v21, %v4479_v11  ;;  %3642 = vmatmul.mubr.msk.bf16.vlgmr.msra.gmra.mrb[8].mxu1 %vm227_vm1, %v713_v20 }
 0x260   :  { %v586_v36 = vmul.f32 %v578_v2, %v578_v2  ;;  %v710_v29 = vadd.f32 %v578_v2, %v4472_v9  ;;  %v698_v9 = vld [vmem:[%s5483_s7] sm:$0xff] }
 0x261   :  { %v3919_v26 = vpack.c.bf16 %v585_v23, %v584_v4  ;;  %v579_v27 = vsub.f32 %v571_v25, %v4559_v38  ;;  %v714_v28 = vpack.c.bf16 %v709_v24, %v708_v22 }
 0x263   :  { %v587_v30 = vmul.f32 %v579_v27, %v579_v27  ;;  %v711_v33 = vadd.f32 %v579_v27, %v4479_v11  ;;  %3645 = vmatprep.mubr.msk.bf16.mxu1 %vm227_vm1, %v714_v28  ;;  %v699_v11 = vld [vmem:[%s5483_s7 + $0x8] sm:$0xff]  ;;  %s4334_s7 = smov 120  }
 0x264   :  { %3917 = vmatpush3.bf16.xpose.msk.msra.mxu0 %vm4615_vm3, %v3915_v19  ;;  %v3926_v38 = vpack.c.bf16 %v699_v11, %v698_v9  ;;  %v4740_v19 = vshrl.u32 %v1074_v17, 7 }
 0x265   :  { %v3923_v6 = vpack.c.bf16 %v587_v30, %v586_v36  ;;  %v715_v7 = vpack.c.bf16 %v711_v33, %v710_v29  ;;  %3918 = vmatprep.subr.bf16.mxu0 %v4327_v56 }
 0x266   :  { %v1076_v20 = vsub.s32 0, %v4740_v19  ;;  %v1337_v37 = vsub.s32 1, %v4740_v19  ;;  %v1614_v22 = vsub.s32 2, %v4740_v19 }
 0x267   :  { %3646 = vmatmul.mubr.msk.bf16.gmra.mrb[12].mxu1 %vm227_vm1, %v715_v7 }
 0x268   :  { %3683 = vmatprep.mubr.msk.f32.mxu1 %vm4328_vm2, %v4329_v15 }
 0x26c   :  { %3921 = vmatpush3.bf16.xpose.msk.msra.mxu0 %vm4615_vm3, %v3919_v26 }
 0x26d   :  { %3922 = vmatprep.subr.bf16.mxu0 %v4327_v56 }
 0x274   :  { %3925 = vmatpush3.bf16.xpose.msk.msra.mxu0 %vm4615_vm3, %v3923_v6 }
 0x275   :  { %3927 = vmatprep.subr.bf16.mxu0 %v3926_v38 }
 0x27b   :  { %3635 = vmatmul.mubr.msk.f32.vlgmr.msra.gmra.mrb[8].mxu0 %vm227_vm1, %v4330_v39 }
 0x27c   :  { %3929 = vmatpush3.bf16.msra.mxu0 %v3926_v38 }
 0x27d   :  { %3653 = vmatprep.subr.mxu0 %v700_v41 }
 0x280   :  { %3654 = vmatpush3.msra.mxu0 %v700_v41 }
 0x287   :  { %4044 = vset.pattern.permute.xlu0 %v4332_v62 }
 0x2d6   :  { %v941_v60 = vpop.trf.xlu0 }
 0x332   :  { %v3643_v45 = vpop.f32.mrb[8].mxu1 }
 0x333   :  { %v764_v46 = vpop.f32.mrb[9].mxu1 }
 0x334   :  { %v3644_v47 = vpop.f32.mrb[10].mxu1  ;;  %3655 = vmatprep.mubr.msk.f32.mxu0 %vm795_vm4, %v764_v46 }
 0x335   :  { %v4671_v48 = vpack.c.bf16 %v3644_v47, %v3643_v45  ;;  %v767_v49 = vpop.f32.mrb[11].mxu1 }
 0x336   :  { %v4679_v51 = vpack.c.bf16 %v767_v49, %v764_v46  ;;  %3656 = vmatmul.mubr.msk.f32.vlgmr.msra.gmra.mrb[10].mxu0 %vm795_vm4, %v767_v49 }
 0x337   :  { %3658 = vmatprep.mubr.msk.f32.mxu0 %vm795_vm4, %v3643_v45 }
 0x338   :  { %3933 = vmatpush3.bf16.xpose.msk.msra.mxu1 %vm4675_vm5, %v4679_v51  ;;  %3686 = vmatprep.subr.bf16.mxu0 %v4679_v51 }
 0x339   :  { %3687 = vmatpush3.bf16.msra.mxu0 %v4679_v51  ;;  %3934 = vmatprep.subr.bf16.mxu1 %v4327_v56 }
 0x33a   :  { %v3647_v52 = vpop.f32.mrb[12].mxu1  ;;  %3659 = vmatmul.mubr.msk.f32.gmra.mrb[12].mxu0 %vm795_vm4, %v3644_v47  ;;  %3688 = vmatprep.subr.bf16.mxu0 %v4671_v48 }
 0x33b   :  { %v780_v53 = vpop.f32.mrb[13].mxu1 }
 0x33c   :  { %v3648_v54 = vpop.f32.mrb[14].mxu1  ;;  %3661 = vmatprep.mubr.msk.f32.mxu0 %vm795_vm4, %v780_v53 }
 0x33d   :  { %v4692_v32 = vpack.c.bf16 %v3648_v54, %v3647_v52  ;;  %v783_v55 = vpop.f32.mrb[15].mxu1  ;;  %3689 = vmatpush3.bf16.msra.mxu0 %v4671_v48 }
 0x33e   :  { %v4695_v57 = vpack.c.bf16 %v783_v55, %v780_v53  ;;  %3662 = vmatmul.mubr.msk.f32.gmra.mrb[14].mxu0 %vm795_vm4, %v783_v55 }
 0x33f   :  { %3664 = vmatprep.mubr.msk.f32.mxu0 %vm795_vm4, %v3647_v52 }
 0x340   :  { %3937 = vmatpush3.bf16.xpose.msk.msra.mxu1 %vm4675_vm5, %v4671_v48  ;;  %3690 = vmatprep.subr.bf16.mxu0 %v4695_v57 }
 0x341   :  { %3691 = vmatpush3.bf16.msra.mxu0 %v4695_v57  ;;  %3938 = vmatprep.subr.bf16.mxu1 %v4327_v56 }
 0x342   :  { %3665 = vmatmul.mubr.msk.f32.gmra.mrb[16].mxu0 %vm795_vm4, %v3648_v54  ;;  %3692 = vmatprep.subr.bf16.mxu0 %v4692_v32 }
 0x345   :  { %3693 = vmatpush3.bf16.msra.mxu0 %v4692_v32 }
 0x348   :  { %3941 = vmatpush3.bf16.xpose.msk.msra.mxu1 %vm4675_vm5, %v4695_v57 }
 0x349   :  { %3942 = vmatprep.subr.bf16.mxu1 %v4327_v56 }
 0x34e   :  { %v681_v58 = vpop.f32.mrb[8].mxu0 }
 0x34f   :  { %v3636_v59 = vpop.f32.mrb[9].mxu0  ;;  %4058 = vrsqrt.f32 %v681_v58  ;;  %vm687_vm6 = vcmp.eq.f32.partialorder %v681_v58, inf  ;;  %v690_v34 = vand.u32 2147483648, %v681_v58  ;;  %vm689_vm7 = vcmp.eq.f32.partialorder %v681_v58, 0.0 }
 0x350   :  { %3945 = vmatpush3.bf16.xpose.msk.msra.mxu1 %vm4675_vm5, %v4692_v32 }
 0x357   :  { %3684 = vmatmul.mubr.msk.f32.vlgmr.msra.gmra.mrb[16].mxu1 %vm795_vm4, %v941_v60  ;;  %v4767_v60 = vld [vmem:[%s5478_s2 + $0x8] sm:$0xff] }
 0x358   :  { %vm81_vm9 = vcmp.gt.f32.partialorder %v4767_v60, 0.0 }
 0x359   :  { %v4059_v61 = vpop.eup %4058 }
 0x35a   :  { %v686_v63 = vmul.f32 %v4059_v61, %v681_v58 }
 0x35c   :  { %v688_v3 = vsel %vm687_vm6, %v681_v58, %v686_v63 }
 0x35d   :  { %v691_v5 = vsel %vm689_vm7, %v690_v34, %v688_v3 }
 0x35e   :  { %693 = vst.msk [vmem:[#allocation2] sm:$0x1] %vm692_vm8, %v691_v5 }
 0x409   :  { %v3657_v31 = vpop.f32.mrb[10].mxu0 }
 0x40a   :  { %1041 = vperm.xlu1 %4034, %v3657_v31   ;;  %v886_v8 = vpop.f32.mrb[11].mxu0 }
 0x40d   :  { %v3660_v10 = vpop.f32.mrb[12].mxu0 }
 0x40e   :  { %4035 = vset.pattern.permute.xlu1 %v4332_v62  ;;  %v896_v0 = vpop.f32.mrb[13].mxu0 }
 0x40f   :  { %1308 = vperm.xlu1 %4035, %v3657_v31   ;;  %1312 = vperm.xlu0 %4044, %v896_v0  }
 0x411   :  { %v3663_v12 = vpop.f32.mrb[14].mxu0 }
 0x412   :  { %v906_v1 = vpop.f32.mrb[15].mxu0 }
 0x413   :  { %4036 = vset.pattern.permute.xlu1 %v4333_v13  ;;  %4053 = vset.pattern.permute.xlu0 %v4333_v13 }
 0x414   :  { %1585 = vperm.xlu1 %4036, %v3657_v31   ;;  %1601 = vperm.xlu0 %4053, %v3663_v12  }
 0x415   :  { %v3666_v14 = vpop.f32.mrb[16].mxu0 }
 0x416   :  { %v916_v16 = vpop.f32.mrb[17].mxu0 }
 0x418   :  { %4037 = vset.pattern.permute.xlu1 %v4331_v44  ;;  %1435 = vrot.lane.b32.xlu0 %v4679_v51, %s4334_s7 }
 0x419   :  { %1036 = vperm.xlu1 %4037, %v886_v8  }
 0x41c   :  { %1437 = vrot.lane.b32.xlu0 %v4671_v48, %s4334_s7 }
 0x41d   :  { %4038 = vset.pattern.permute.xlu1 %v4332_v62 }
 0x41e   :  { %1304 = vperm.xlu1 %4038, %v886_v8  }
 0x420   :  { %1439 = vrot.lane.b32.xlu0 %v4695_v57, %s4334_s7 }
 0x422   :  { %4039 = vset.pattern.permute.xlu1 %v4333_v13 }
 0x423   :  { %1581 = vperm.xlu1 %4039, %v886_v8  }
 0x424   :  { %1441 = vrot.lane.b32.xlu0 %v4692_v32, %s4334_s7  ;;  %s4337_s7 = smov 8  }
 0x427   :  { %4040 = vset.pattern.permute.xlu1 %v4331_v44 }
 0x428   :  { %1051 = vperm.xlu1 %4040, %v3660_v10  }
 0x42a   :  { %v1026_v35 = vpop.f32.mrb[16].mxu1 }
 0x42b   :  { %v3685_v18 = vpop.f32.mrb[17].mxu1  ;;  %v4746_v4 = vrot.slane %v1026_v35, %v1076_v20  ;;  %v4748_v2 = vrot.slane %v1026_v35, %v1337_v37  ;;  %v4754_v28 = vrot.slane %v1026_v35, %v1614_v22 }
 0x42c   :  { %4041 = vset.pattern.permute.xlu1 %v4332_v62  ;;  %v4790_v18 = vld [vmem:[%s5478_s2] sm:$0xff] }
 0x42d   :  { %1316 = vperm.xlu1 %4041, %v3660_v10   ;;  %vm80_vm11 = vcmp.gt.f32.partialorder %v4790_v18, 0.0 }
 0x431   :  { %4042 = vset.pattern.permute.xlu1 %v4333_v13 }
 0x432   :  { %1593 = vperm.xlu1 %4042, %v3660_v10  }
 0x436   :  { %4043 = vset.pattern.permute.xlu1 %v4331_v44 }
 0x437   :  { %1046 = vperm.xlu1 %4043, %v896_v0  }
 0x43b   :  { %4045 = vset.pattern.permute.xlu1 %v4333_v13 }
 0x43c   :  { %1589 = vperm.xlu1 %4045, %v896_v0  }
 0x440   :  { %4046 = vset.pattern.permute.xlu1 %v4331_v44 }
 0x441   :  { %1061 = vperm.xlu1 %4046, %v3663_v12  }
 0x445   :  { %4047 = vset.pattern.permute.xlu1 %v4332_v62 }
 0x446   :  { %1324 = vperm.xlu1 %4047, %v3663_v12  }
 0x44a   :  { %4048 = vset.pattern.permute.xlu1 %v4331_v44 }
 0x44b   :  { %1056 = vperm.xlu1 %4048, %v906_v1  }
 0x44f   :  { %4049 = vset.pattern.permute.xlu1 %v4332_v62 }
 0x450   :  { %1320 = vperm.xlu1 %4049, %v906_v1  }
 0x454   :  { %4050 = vset.pattern.permute.xlu1 %v4331_v44 }
 0x455   :  { %1071 = vperm.xlu1 %4050, %v3666_v14  }
 0x459   :  { %1066 = vperm.xlu1 %4050, %v916_v16  }
 0x45d   :  { %4051 = vset.pattern.permute.xlu1 %v4332_v62 }
 0x45e   :  { %1332 = vperm.xlu1 %4051, %v3666_v14  }
 0x462   :  { %4052 = vset.pattern.permute.xlu1 %v4333_v13 }
 0x463   :  { %1597 = vperm.xlu1 %4052, %v906_v1  }
 0x467   :  { %4054 = vset.pattern.permute.xlu1 %v4332_v62  ;;  %v4772_v62 = vld [vmem:[%s5478_s2 + $0x10] sm:$0xff] }
 0x468   :  { %1328 = vperm.xlu1 %4054, %v916_v16   ;;  %vm82_vm10 = vcmp.gt.f32.partialorder %v4772_v62, 0.0 }
 0x46c   :  { %4055 = vset.pattern.permute.xlu1 %v4333_v13 }
 0x46d   :  { %1605 = vperm.xlu1 %4055, %v916_v16  }
 0x471   :  { %1609 = vperm.xlu1 %4055, %v3666_v14  }
 0x475   :  { %1708 = vrot.lane.b32.xlu1 %v4679_v51, %s4335_s8 }
 0x476   :  { %4056 = vset.pattern.permute.xlu1 %v4331_v44 }
 0x479   :  { %1710 = vrot.lane.b32.xlu1 %v4671_v48, %s4335_s8 }
 0x47d   :  { %1712 = vrot.lane.b32.xlu1 %v4695_v57, %s4335_s8 }
 0x481   :  { %1714 = vrot.lane.b32.xlu1 %v4692_v32, %s4335_s8 }
 0x489   :  { %v1042_v21 = vpop.permute.xlu1 %1041 }
 0x48a   :  { %v1079_v25 = vadd.f32 %v4746_v4, %v1042_v21 }
 0x48c   :  { %v1087_v6 = vsub.f32 0.0, %v1079_v25  ;;  %v1095_v7 = vmul.f32 -0.2, %v1079_v25 }
 0x48e   :  { %v1309_v23 = vpop.permute.xlu1 %1308  ;;  %v1313_v24 = vpop.permute.xlu0 %1312  ;;  %v1103_v47 = vmin.f32 %v1087_v6, %v1095_v7 }
 0x48f   :  { %v1340_v26 = vadd.f32 %v4748_v2, %v1309_v23  ;;  %v1341_v27 = vadd.f32 %v4748_v2, %v1313_v24 }
 0x490   :  { %v1112_v54 = vmul.f32 1.442695, %v1103_v47 }
 0x491   :  { %v1348_v36 = vsub.f32 0.0, %v1340_v26  ;;  %v1356_v29 = vmul.f32 -0.2, %v1340_v26  ;;  %v1349_v30 = vsub.f32 0.0, %v1341_v27  ;;  %v1357_v33 = vmul.f32 -0.2, %v1341_v27 }
 0x493   :  { %v1364_v9 = vmin.f32 %v1348_v36, %v1356_v29  ;;  %v1365_v11 = vmin.f32 %v1349_v30, %v1357_v33  ;;  %v1586_v38 = vpop.permute.xlu1 %1585  ;;  %v4756_v40 = vpop.permute.xlu0 %1601 }
 0x494   :  { %v1617_v41 = vadd.f32 %v4754_v28, %v1586_v38 }
 0x495   :  { %v1373_v42 = vmul.f32 1.442695, %v1364_v9  ;;  %v1375_v43 = vmul.f32 1.442695, %v1365_v11 }
 0x496   :  { %v1625_v45 = vsub.f32 0.0, %v1617_v41  ;;  %v1633_v46 = vmul.f32 -0.2, %v1617_v41 }
 0x497   :  { %4060 = vpow2.f32 %v1373_v42  ;;  %v4759_v48 = vpop.permute.xlu0 %1435 }
 0x498   :  { %4062 = vpow2.f32 %v1375_v43  ;;  %v1641_v49 = vmin.f32 %v1625_v45, %v1633_v46  ;;  %v1037_v51 = vpop.permute.xlu1 %1036  ;;  %3702 = vmatprep.subr.bf16.mxu0 %v4759_v48 }
 0x499   :  { %v1078_v52 = vadd.f32 %v4746_v4, %v1037_v51 }
 0x49a   :  { %v1650_v53 = vmul.f32 1.442695, %v1641_v49 }
 0x49b   :  { %v1086_v32 = vsub.f32 0.0, %v1078_v52  ;;  %v1094_v55 = vmul.f32 -0.2, %v1078_v52 }
 0x49c   :  { %4064 = vpow2.f32 %v1650_v53 }
 0x49d   :  { %v1102_v57 = vmin.f32 %v1086_v32, %v1094_v55  ;;  %v1305_v58 = vpop.permute.xlu1 %1304  ;;  %4066 = vpow2.f32 %v1112_v54 }
 0x49e   :  { %v1339_v59 = vadd.f32 %v4748_v2, %v1305_v58 }
 0x49f   :  { %v1110_v61 = vmul.f32 1.442695, %v1102_v57 }
 0x4a0   :  { %v1347_v63 = vsub.f32 0.0, %v1339_v59  ;;  %v1355_v34 = vmul.f32 -0.2, %v1339_v59 }
 0x4a1   :  { %v4061_v3 = vpop.eup %4060  ;;  %4068 = vpow2.f32 %v1110_v61 }
 0x4a2   :  { %v4063_v5 = vpop.eup %4062  ;;  %v1363_v31 = vmin.f32 %v1347_v63, %v1355_v34  ;;  %v1582_v8 = vpop.permute.xlu1 %1581  ;;  %v4777_v10 = vsel %vm81_vm9, %v4061_v3, 0.0 }
 0x4a3   :  { %v1616_v0 = vadd.f32 %v4754_v28, %v1582_v8  ;;  %v1398_v12 = vsel %vm97_vm0, %v4777_v10, 0.0  ;;  %v4785_v16 = vsel %vm82_vm10, %v4063_v5, 0.0 }
 0x4a4   :  { %v1371_v1 = vmul.f32 1.442695, %v1363_v31  ;;  %v1401_v23 = vsel %vm97_vm0, %v4785_v16, 0.0 }
 0x4a5   :  { %v1624_v13 = vsub.f32 0.0, %v1616_v0  ;;  %v1632_v14 = vmul.f32 -0.2, %v1616_v0  ;;  %1399 = vadd.xlane.f32.xlu1 %v1398_v12  ;;  %v4827_v12 = vld [vmem:[%s5478_s2 + $0x18] sm:$0xff] }
 0x4a6   :  { %v4065_v35 = vpop.eup %4064  ;;  %4070 = vpow2.f32 %v1371_v1  ;;  %v1621_v1 = vadd.f32 %v4754_v28, %v4756_v40  ;;  %vm83_vm12 = vcmp.gt.f32.partialorder %v4827_v12, 0.0 }
 0x4a7   :  { %v1640_v17 = vmin.f32 %v1624_v13, %v1632_v14  ;;  %v1052_v37 = vpop.permute.xlu1 %1051  ;;  %v1665_v21 = vsel %vm81_vm9, %v4065_v35, 0.0  ;;  %v4067_v24 = vpop.eup %4066 }
 0x4a8   :  { %v1675_v22 = vsel %vm97_vm0, %v1665_v21, 0.0  ;;  %v4804_v29 = vsel %vm81_vm9, %v4067_v24, 0.0  ;;  %v1081_v30 = vadd.f32 %v4746_v4, %v1052_v37  ;;  %v1637_v24 = vmul.f32 -0.2, %v1621_v1 }
 0x4a9   :  { %v1648_v25 = vmul.f32 1.442695, %v1640_v17  ;;  %1676 = vadd.xlane.f32.xlu0 %v1675_v22  ;;  %1402 = vadd.xlane.f32.xlu1 %v1401_v23  ;;  %v1629_v23 = vsub.f32 0.0, %v1621_v1 }
 0x4aa   :  { %v1089_v38 = vsub.f32 0.0, %v1081_v30  ;;  %v1097_v41 = vmul.f32 -0.2, %v1081_v30 }
 0x4ab   :  { %v4069_v26 = vpop.eup %4068  ;;  %4072 = vpow2.f32 %v1648_v25  ;;  %v1645_v30 = vmin.f32 %v1629_v23, %v1637_v24 }
 0x4ac   :  { %v1317_v27 = vpop.permute.xlu1 %1316  ;;  %v4800_v36 = vsel %vm80_vm11, %v4069_v26, 0.0  ;;  %v1105_v54 = vmin.f32 %v1089_v38, %v1097_v41 }
 0x4ad   :  { %v1342_v33 = vadd.f32 %v4748_v2, %v1317_v27  ;;  %v1166_v6 = vpack.c.bf16 %v4804_v29, %v4800_v36 }
 0x4ae   :  { %v1116_v34 = vmul.f32 1.442695, %v1105_v54 }
 0x4af   :  { %v1350_v7 = vsub.f32 0.0, %v1342_v33  ;;  %v1358_v9 = vmul.f32 -0.2, %v1342_v33  ;;  %3694 = vmatprep.mubr.msk.bf16.mxu0 %vm97_vm0, %v1166_v6 }
 0x4b0   :  { %v4071_v11 = vpop.eup %4070 }
 0x4b1   :  { %v1366_v42 = vmin.f32 %v1350_v7, %v1358_v9  ;;  %v1594_v43 = vpop.permute.xlu1 %1593  ;;  %v4813_v45 = vsel %vm80_vm11, %v4071_v11, 0.0 }
 0x4b2   :  { %v1619_v46 = vadd.f32 %v4754_v28, %v1594_v43  ;;  %v1395_v47 = vsel %vm97_vm0, %v4813_v45, 0.0 }
 0x4b3   :  { %v1377_v49 = vmul.f32 1.442695, %v1366_v42  ;;  %1396 = vadd.xlane.f32.xlu0 %v1395_v47  ;;  %v1658_v47 = vmul.f32 1.442695, %v1645_v30 }
 0x4b4   :  { %v1627_v51 = vsub.f32 0.0, %v1619_v46  ;;  %v1635_v52 = vmul.f32 -0.2, %v1619_v46 }
 0x4b5   :  { %v4073_v53 = vpop.eup %4072  ;;  %4074 = vpow2.f32 %v1377_v49 }
 0x4b6   :  { %v1643_v32 = vmin.f32 %v1627_v51, %v1635_v52  ;;  %v1047_v55 = vpop.permute.xlu1 %1046  ;;  %v1664_v57 = vsel %vm80_vm11, %v4073_v53, 0.0  ;;  %v1438_v51 = vpop.permute.xlu0 %1437 }
 0x4b7   :  { %v1080_v58 = vadd.f32 %v4746_v4, %v1047_v55  ;;  %v1672_v59 = vsel %vm97_vm0, %v1664_v57, 0.0  ;;  %v1704_v61 = vpack.c.bf16 %v1665_v21, %v1664_v57 }
 0x4b8   :  { %v1654_v63 = vmul.f32 1.442695, %v1643_v32  ;;  %1673 = vadd.xlane.f32.xlu0 %v1672_v59 }
 0x4b9   :  { %v1088_v3 = vsub.f32 0.0, %v1080_v58  ;;  %v1096_v5 = vmul.f32 -0.2, %v1080_v58  ;;  %3726 = vmatprep.mubr.msk.bf16.mxu1 %vm97_vm0, %v1704_v61 }
 0x4ba   :  { %4076 = vpow2.f32 %v1654_v63 }
 0x4bb   :  { %v1104_v31 = vmin.f32 %v1088_v3, %v1096_v5  ;;  %v1590_v8 = vpop.permute.xlu1 %1589  ;;  %4078 = vpow2.f32 %v1116_v34 }
 0x4bc   :  { %v1618_v0 = vadd.f32 %v4754_v28, %v1590_v8  ;;  %v1440_v8 = vpop.permute.xlu0 %1439 }
 0x4bd   :  { %v1114_v13 = vmul.f32 1.442695, %v1104_v31 }
 0x4be   :  { %v1626_v14 = vsub.f32 0.0, %v1618_v0  ;;  %v1634_v35 = vmul.f32 -0.2, %v1618_v0 }
 0x4bf   :  { %v4075_v17 = vpop.eup %4074  ;;  %4080 = vpow2.f32 %v1114_v13 }
 0x4c0   :  { %v1642_v37 = vmin.f32 %v1626_v14, %v1634_v35  ;;  %v1062_v21 = vpop.permute.xlu1 %1061  ;;  %v4834_v22 = vsel %vm83_vm12, %v4075_v17, 0.0  ;;  %v1442_v23 = vpop.permute.xlu0 %1441 }
 0x4c1   :  { %v1083_v25 = vadd.f32 %v4746_v4, %v1062_v21  ;;  %v1404_v40 = vsel %vm97_vm0, %v4834_v22, 0.0  ;;  %v4870_v21 = vld [vmem:[%s5478_s2 + $0x28] sm:$0xff] }
 0x4c2   :  { %v1652_v26 = vmul.f32 1.442695, %v1642_v37  ;;  %1405 = vadd.xlane.f32.xlu0 %v1404_v40  ;;  %vm85_vm13 = vcmp.gt.f32.partialorder %v4870_v21, 0.0 }
 0x4c3   :  { %v1091_v33 = vsub.f32 0.0, %v1083_v25  ;;  %v1099_v6 = vmul.f32 -0.2, %v1083_v25 }
 0x4c4   :  { %v4077_v27 = vpop.eup %4076  ;;  %4082 = vpow2.f32 %v1652_v26 }
 0x4c5   :  { %v1325_v7 = vpop.permute.xlu1 %1324  ;;  %v4841_v9 = vsel %vm83_vm12, %v4077_v27, 0.0  ;;  %v4079_v41 = vpop.eup %4078  ;;  %v1107_v49 = vmin.f32 %v1091_v33, %v1099_v6  ;;  %4084 = vpow2.f32 %v1658_v47  ;;  %v4875_v27 = vld [vmem:[%s5478_s2 + $0x20] sm:$0xff] }
 0x4c6   :  { %v1344_v11 = vadd.f32 %v4748_v2, %v1325_v7  ;;  %v1681_v38 = vsel %vm97_vm0, %v4841_v9, 0.0  ;;  %v4852_v53 = vsel %vm83_vm12, %v4079_v41, 0.0  ;;  %vm5498_vm14 = vcmp.gt.f32.partialorder %v4875_v27, 0.0 }
 0x4c7   :  { %1682 = vadd.xlane.f32.xlu0 %v1681_v38  ;;  %v1120_v59 = vmul.f32 1.442695, %v1107_v49 }
 0x4c8   :  { %v1352_v42 = vsub.f32 0.0, %v1344_v11  ;;  %v1360_v43 = vmul.f32 -0.2, %v1344_v11 }
 0x4c9   :  { %v4081_v46 = vpop.eup %4080 }
 0x4ca   :  { %v4848_v52 = vsel %vm82_vm10, %v4081_v46, 0.0  ;;  %v1368_v54 = vmin.f32 %v1352_v42, %v1360_v43  ;;  %v1057_v32 = vpop.permute.xlu1 %1056 }
 0x4cb   :  { %v1167_v55 = vpack.c.bf16 %v4852_v53, %v4848_v52  ;;  %v1082_v57 = vadd.f32 %v4746_v4, %v1057_v32 }
 0x4cc   :  { %v1381_v58 = vmul.f32 1.442695, %v1368_v54 }
 0x4cd   :  { %v1090_v61 = vsub.f32 0.0, %v1082_v57  ;;  %v1098_v63 = vmul.f32 -0.2, %v1082_v57  ;;  %3695 = vmatmul.mubr.msk.bf16.vlgmr.msra.gmra.mrb[20].mxu0 %vm97_vm0, %v1167_v55 }
 0x4ce   :  { %v4083_v34 = vpop.eup %4082  ;;  %4086 = vpow2.f32 %v1381_v58  ;;  %3703 = vmatpush3.bf16.msra.mxu0 %v4759_v48 }
 0x4cf   :  { %v1106_v3 = vmin.f32 %v1090_v61, %v1098_v63  ;;  %3704 = vmatprep.subr.bf16.mxu0 %v1438_v51  ;;  %v1321_v5 = vpop.permute.xlu1 %1320  ;;  %v4861_v31 = vsel %vm82_vm10, %v4083_v34, 0.0  ;;  %4088 = vpow2.f32 %v1120_v59  ;;  %v4085_v25 = vpop.eup %4084 }
 0x4d0   :  { %v1343_v0 = vadd.f32 %v4748_v2, %v1321_v5  ;;  %v1678_v1 = vsel %vm97_vm0, %v4861_v31, 0.0  ;;  %v4888_v47 = vsel %vm85_vm13, %v4085_v25, 0.0 }
 0x4d1   :  { %v1118_v13 = vmul.f32 1.442695, %v1106_v3  ;;  %1679 = vadd.xlane.f32.xlu1 %v1678_v1  ;;  %v1687_v32 = vsel %vm97_vm0, %v4888_v47, 0.0 }
 0x4d2   :  { %v1351_v14 = vsub.f32 0.0, %v1343_v0  ;;  %v1359_v35 = vmul.f32 -0.2, %v1343_v0  ;;  %3705 = vmatpush3.bf16.msra.mxu0 %v1438_v51 }
 0x4d3   :  { %4090 = vpow2.f32 %v1118_v13  ;;  %3706 = vmatprep.subr.bf16.mxu0 %v1440_v8 }
 0x4d4   :  { %v1367_v48 = vmin.f32 %v1351_v14, %v1359_v35  ;;  %v1072_v17 = vpop.permute.xlu1 %1071 }
 0x4d5   :  { %v1085_v37 = vadd.f32 %v4746_v4, %v1072_v17  ;;  %v4916_v17 = vld [vmem:[%s5478_s2 + $0x38] sm:$0xff] }
 0x4d6   :  { %v1379_v24 = vmul.f32 1.442695, %v1367_v48  ;;  %3707 = vmatpush3.bf16.msra.mxu0 %v1440_v8  ;;  %v4911_v48 = vld [vmem:[%s5478_s2 + $0x30] sm:$0xff]  ;;  %vm5496_vm1 = vcmp.gt.f32.partialorder %v4916_v17, 0.0 }
 0x4d7   :  { %v1093_v40 = vsub.f32 0.0, %v1085_v37  ;;  %v1101_v26 = vmul.f32 -0.2, %v1085_v37  ;;  %3708 = vmatprep.subr.bf16.mxu0 %v1442_v23  ;;  %vm5497_vm15 = vcmp.gt.f32.partialorder %v4911_v48, 0.0 }
 0x4d8   :  { %v4087_v30 = vpop.eup %4086  ;;  %4092 = vpow2.f32 %v1379_v24  ;;  %v1067_v33 = vpop.permute.xlu1 %1066 }
 0x4d9   :  { %v1109_v6 = vmin.f32 %v1093_v40, %v1101_v26  ;;  %v1084_v7 = vadd.f32 %v4746_v4, %v1067_v33  ;;  %v4881_v11 = vsel %vm85_vm13, %v4087_v30, 0.0  ;;  %v4089_v41 = vpop.eup %4088 }
 0x4da   :  { %3709 = vmatpush3.bf16.msra.mxu0 %v1442_v23  ;;  %v1410_v38 = vsel %vm97_vm0, %v4881_v11, 0.0  ;;  %v4899_v57 = vsel %vm85_vm13, %v4089_v41, 0.0 }
 0x4db   :  { %v1124_v42 = vmul.f32 1.442695, %v1109_v6  ;;  %v1092_v43 = vsub.f32 0.0, %v1084_v7  ;;  %v1100_v46 = vmul.f32 -0.2, %v1084_v7  ;;  %1411 = vadd.xlane.f32.xlu0 %v1410_v38 }
 0x4dd   :  { %v4091_v4 = vpop.eup %4090  ;;  %v1108_v49 = vmin.f32 %v1092_v43, %v1100_v46  ;;  %v1333_v51 = vpop.permute.xlu1 %1332  ;;  %4094 = vpow2.f32 %v1124_v42  ;;  %v1427_v43 = vpack.c.bf16 %v4777_v10, %v4813_v45 }
 0x4de   :  { %v1346_v54 = vadd.f32 %v4748_v2, %v1333_v51  ;;  %v4895_v55 = vsel %vm5498_vm14, %v4091_v4, 0.0 }
 0x4df   :  { %v1122_v58 = vmul.f32 1.442695, %v1108_v49  ;;  %1688 = vadd.xlane.f32.xlu0 %v1687_v32  ;;  %v1168_v59 = vpack.c.bf16 %v4899_v57, %v4895_v55 }
 0x4e0   :  { %v1354_v61 = vsub.f32 0.0, %v1346_v54  ;;  %v1362_v63 = vmul.f32 -0.2, %v1346_v54 }
 0x4e1   :  { %4096 = vpow2.f32 %v1122_v58  ;;  %3698 = vmatprep.mubr.msk.bf16.mxu0 %vm97_vm0, %v1168_v59 }
 0x4e2   :  { %v4093_v34 = vpop.eup %4092  ;;  %v1370_v3 = vmin.f32 %v1354_v61, %v1362_v63  ;;  %v1598_v5 = vpop.permute.xlu1 %1597 }
 0x4e3   :  { %v1620_v8 = vadd.f32 %v4754_v28, %v1598_v5  ;;  %v1391_v0 = vsel %vm5498_vm14, %v4093_v34, 0.0  ;;  %v1428_v5 = vpack.c.bf16 %v4834_v22, %v4785_v16 }
 0x4e4   :  { %v1385_v1 = vmul.f32 1.442695, %v1370_v3  ;;  %v1407_v13 = vsel %vm97_vm0, %v1391_v0, 0.0 }
 0x4e5   :  { %v1628_v14 = vsub.f32 0.0, %v1620_v8  ;;  %v1636_v35 = vmul.f32 -0.2, %v1620_v8  ;;  %1408 = vadd.xlane.f32.xlu1 %v1407_v13 }
 0x4e6   :  { %4098 = vpow2.f32 %v1385_v1  ;;  %v1429_v1 = vpack.c.bf16 %v4881_v11, %v1391_v0 }
 0x4e7   :  { %v1644_v37 = vmin.f32 %v1628_v14, %v1636_v35  ;;  %v1329_v23 = vpop.permute.xlu1 %1328  ;;  %v4095_v25 = vpop.eup %4094 }
 0x4e8   :  { %v1345_v24 = vadd.f32 %v4748_v2, %v1329_v23  ;;  %v4927_v41 = vsel %vm5496_vm1, %v4095_v25, 0.0 }
 0x4e9   :  { %v1656_v40 = vmul.f32 1.442695, %v1644_v37 }
 0x4ea   :  { %v1353_v26 = vsub.f32 0.0, %v1345_v24  ;;  %v1361_v30 = vmul.f32 -0.2, %v1345_v24 }
 0x4eb   :  { %v4097_v33 = vpop.eup %4096  ;;  %4100 = vpow2.f32 %v1656_v40  ;;  %v4270_v40 = vld [vmem:[%s5502_s24] sm:$0xff] }
 0x4ec   :  { %v1369_v6 = vmin.f32 %v1353_v26, %v1361_v30  ;;  %v1606_v7 = vpop.permute.xlu1 %1605  ;;  %v4923_v38 = vsel %vm5497_vm15, %v4097_v33, 0.0  ;;  %v1705_v33 = vpack.c.bf16 %v4841_v9, %v4861_v31  ;;  %v1137_v9 = vsel %vm97_vm0, %v4804_v29, 0.0 }
 0x4ed   :  { %v1622_v2 = vadd.f32 %v4754_v28, %v1606_v7  ;;  %v1169_v42 = vpack.c.bf16 %v4927_v41, %v4923_v38  ;;  %v1155_v29 = vsel %vm97_vm0, %v4927_v41, 0.0 }
 0x4ee   :  { %v1383_v46 = vmul.f32 1.442695, %v1369_v6 }
 0x4ef   :  { %v1630_v4 = vsub.f32 0.0, %v1622_v2  ;;  %v1638_v49 = vmul.f32 -0.2, %v1622_v2  ;;  %3699 = vmatmul.mubr.msk.bf16.gmra.mrb[24].mxu0 %vm97_vm0, %v1169_v42  ;;  %v1134_v2 = vsel %vm97_vm0, %v4800_v36, 0.0  ;;  %v1146_v36 = vsel %vm97_vm0, %v4895_v55, 0.0 }
 0x4f0   :  { %v4099_v51 = vpop.eup %4098  ;;  %4102 = vpow2.f32 %v1383_v46  ;;  %3710 = vmatprep.mubr.msk.bf16.mxu0 %vm97_vm0, %v1427_v43  ;;  %v1610_v54 = vpop.permute.xlu1 %1609  ;;  %v1140_v43 = vsel %vm97_vm0, %v4848_v52, 0.0  ;;  %v1152_v46 = vsel %vm97_vm0, %v4923_v38, 0.0  ;;  %v1149_v52 = vsel %vm97_vm0, %v4899_v57, 0.0 }
 0x4f1   :  { %v1646_v32 = vmin.f32 %v1630_v4, %v1638_v49  ;;  %v1623_v58 = vadd.f32 %v4754_v28, %v1610_v54  ;;  %v1394_v59 = vsel %vm5496_vm1, %v4099_v51, 0.0 }
 0x4f2   :  { %v1416_v61 = vsel %vm97_vm0, %v1394_v59, 0.0 }
 0x4f3   :  { %v1660_v63 = vmul.f32 1.442695, %v1646_v32  ;;  %v1631_v10 = vsub.f32 0.0, %v1623_v58  ;;  %v1639_v45 = vmul.f32 -0.2, %v1623_v58  ;;  %1417 = vadd.xlane.f32.xlu0 %v1416_v61 }
 0x4f4   :  { %v1709_v34 = vpop.permute.xlu1 %1708 }
 0x4f5   :  { %v4101_v3 = vpop.eup %4100  ;;  %4104 = vpow2.f32 %v1660_v63  ;;  %v1647_v8 = vmin.f32 %v1631_v10, %v1639_v45  ;;  %3718 = vmatprep.subr.bf16.mxu1 %v1709_v34 }
 0x4f6   :  { %3719 = vmatpush3.bf16.msra.mxu1 %v1709_v34  ;;  %v1668_v28 = vsel %vm5498_vm14, %v4101_v3, 0.0 }
 0x4f7   :  { %v1662_v13 = vmul.f32 1.442695, %v1647_v8  ;;  %3711 = vmatmul.mubr.msk.bf16.vlgmr.msra.gmra.mrb[28].mxu0 %vm97_vm0, %v1428_v5  ;;  %v1684_v14 = vsel %vm97_vm0, %v1668_v28, 0.0  ;;  %v1706_v7 = vpack.c.bf16 %v4888_v47, %v1668_v28  ;;  %v1143_v47 = vsel %vm97_vm0, %v4852_v53, 0.0 }
 0x4f8   :  { %3714 = vmatprep.mubr.msk.bf16.mxu0 %vm97_vm0, %v1429_v1  ;;  %1685 = vadd.xlane.f32.xlu1 %v1684_v14  ;;  %v1711_v35 = vpop.permute.xlu1 %1710 }
 0x4f9   :  { %4106 = vpow2.f32 %v1662_v13  ;;  %3720 = vmatprep.subr.bf16.mxu1 %v1711_v35 }
 0x4fa   :  { %v4103_v16 = vpop.eup %4102  ;;  %3721 = vmatpush3.bf16.msra.mxu1 %v1711_v35 }
 0x4fb   :  { %v1393_v22 = vsel %vm5497_vm15, %v4103_v16, 0.0 }
 0x4fc   :  { %v1713_v11 = vpop.permute.xlu1 %1712  ;;  %v1413_v0 = vsel %vm97_vm0, %v1393_v22, 0.0  ;;  %v1430_v37 = vpack.c.bf16 %v1394_v59, %v1393_v22 }
 0x4fd   :  { %1414 = vadd.xlane.f32.xlu1 %v1413_v0  ;;  %3722 = vmatprep.subr.bf16.mxu1 %v1713_v11 }
 0x4fe   :  { %3723 = vmatpush3.bf16.msra.mxu1 %v1713_v11 }
 0x4ff   :  { %v4105_v23 = vpop.eup %4104  ;;  %3715 = vmatmul.mubr.msk.bf16.gmra.mrb[32].mxu0 %vm97_vm0, %v1430_v37 }
 0x500   :  { %v1715_v24 = vpop.permute.xlu1 %1714  ;;  %v1670_v25 = vsel %vm5497_vm15, %v4105_v23, 0.0  ;;  %3750 = vmatprep.mubr.msk.f32.mxu0 %vm97_vm0, %v4270_v40 }
 0x501   :  { %3724 = vmatprep.subr.bf16.mxu1 %v1715_v24  ;;  %v1690_v26 = vsel %vm97_vm0, %v1670_v25, 0.0 }
 0x502   :  { %1691 = vadd.xlane.f32.xlu1 %v1690_v26  ;;  %3725 = vmatpush3.bf16.msra.mxu1 %v1715_v24 }
 0x503   :  { %v4107_v30 = vpop.eup %4106 }
 0x504   :  { %v1671_v6 = vsel %vm5496_vm1, %v4107_v30, 0.0 }
 0x505   :  { %3727 = vmatmul.mubr.msk.bf16.vlgmr.msra.gmra.mrb[20].mxu1 %vm97_vm0, %v1705_v33  ;;  %v1693_v42 = vsel %vm97_vm0, %v1671_v6, 0.0  ;;  %v1707_v31 = vpack.c.bf16 %v1671_v6, %v1670_v25 }
 0x506   :  { %1135 = vadd.xlane.f32.xlu1 %v1134_v2  ;;  %1694 = vadd.xlane.f32.xlu0 %v1693_v42 }
 0x507   :  { %3730 = vmatprep.mubr.msk.bf16.mxu1 %vm97_vm0, %v1706_v7 }
 0x50a   :  { %1141 = vadd.xlane.f32.xlu1 %v1140_v43  ;;  %1138 = vadd.xlane.f32.xlu0 %v1137_v9 }
 0x50d   :  { %3731 = vmatmul.mubr.msk.bf16.gmra.mrb[24].mxu1 %vm97_vm0, %v1707_v31 }
 0x50e   :  { %1147 = vadd.xlane.f32.xlu1 %v1146_v36  ;;  %1144 = vadd.xlane.f32.xlu0 %v1143_v47 }
 0x512   :  { %1153 = vadd.xlane.f32.xlu1 %v1152_v46  ;;  %1150 = vadd.xlane.f32.xlu0 %v1149_v52 }
 0x516   :  { %1156 = vadd.xlane.f32.xlu0 %v1155_v29 }
 0x532   :  { %v1400_v54 = vpop.xlane.xlu1 %1399 }
 0x536   :  { %v1677_v51 = vpop.xlane.xlu0 %1676  ;;  %v1403_v32 = vpop.xlane.xlu1 %1402 }
 0x537   :  { %4108 = vrcp.f32 %v1403_v32 }
 0x538   :  { %4110 = vrcp.f32 %v1400_v54 }
 0x540   :  { %v1397_v38 = vpop.xlane.xlu0 %1396 }
 0x541   :  { %4112 = vrcp.f32 %v1397_v38  ;;  %v4109_v14 = vpop.eup %4108 }
 0x542   :  { %v4111_v23 = vpop.eup %4110 }
 0x545   :  { %v1674_v58 = vpop.xlane.xlu0 %1673 }
 0x54b   :  { %v4113_v40 = vpop.eup %4112 }
 0x54f   :  { %v1406_v10 = vpop.xlane.xlu0 %1405 }
 0x554   :  { %v1683_v5 = vpop.xlane.xlu0 %1682 }
 0x55e   :  { %v1680_v41 = vpop.xlane.xlu1 %1679 }
 0x55f   :  { %4114 = vrcp.f32 %v1680_v41 }
 0x560   :  { %4116 = vrcp.f32 %v1674_v58 }
 0x561   :  { %4118 = vrcp.f32 %v1683_v5 }
 0x562   :  { %4120 = vrcp.f32 %v1677_v51 }
 0x563   :  { %4122 = vrcp.f32 %v1406_v10 }
 0x568   :  { %v1412_v13 = vpop.xlane.xlu0 %1411 }
 0x569   :  { %v4115_v30 = vpop.eup %4114 }
 0x56a   :  { %v4117_v6 = vpop.eup %4116 }
 0x56b   :  { %v4119_v43 = vpop.eup %4118 }
 0x56c   :  { %v1689_v24 = vpop.xlane.xlu0 %1688  ;;  %v4121_v52 = vpop.eup %4120 }
 0x56d   :  { %v4123_v32 = vpop.eup %4122 }
 0x572   :  { %v1409_v45 = vpop.xlane.xlu1 %1408 }
 0x573   :  { %4124 = vrcp.f32 %v1409_v45 }
 0x580   :  { %v1418_v9 = vpop.xlane.xlu0 %1417 }
 0x585   :  { %v1686_v1 = vpop.xlane.xlu1 %1685 }
 0x586   :  { %4126 = vrcp.f32 %v1686_v1 }
 0x58a   :  { %v1415_v22 = vpop.xlane.xlu1 %1414 }
 0x58b   :  { %4128 = vrcp.f32 %v1415_v22 }
 0x58c   :  { %4130 = vrcp.f32 %v1689_v24 }
 0x58d   :  { %4132 = vrcp.f32 %v1412_v13 }
 0x58f   :  { %v1692_v7 = vpop.xlane.xlu1 %1691 }
 0x590   :  { %4134 = vrcp.f32 %v1692_v7 }
 0x591   :  { %4136 = vrcp.f32 %v1418_v9 }
 0x5a0   :  { %v4984_v4 = vpop.f32.mrb[20].mxu0 }
 0x5a1   :  { %v4986_v55 = vpop.f32.mrb[21].mxu0 }
 0x5a2   :  { %v4988_v49 = vpop.f32.mrb[22].mxu0 }
 0x5a3   :  { %v4990_v53 = vpop.f32.mrb[23].mxu0 }
 0x5c2   :  { %v4992_v57 = vpop.f32.mrb[24].mxu0 }
 0x5c3   :  { %v4994_v59 = vpop.f32.mrb[25].mxu0 }
 0x5c4   :  { %v4996_v61 = vpop.f32.mrb[26].mxu0 }
 0x5c5   :  { %v4998_v63 = vpop.f32.mrb[27].mxu0 }
 0x5ca   :  { %v3712_v34 = vpop.f32.mrb[28].mxu0 }
 0x5cb   :  { %v1493_v3 = vpop.f32.mrb[29].mxu0  ;;  %v5000_v35 = vmul.f32 %v4109_v14, %v3712_v34 }
 0x5cc   :  { %v3713_v8 = vpop.f32.mrb[30].mxu0  ;;  %v5011_v36 = vmul.f32 %v4113_v40, %v1493_v3  ;;  %v4125_v3 = vpop.eup %4124 }
 0x5cd   :  { %v1496_v28 = vpop.f32.mrb[31].mxu0  ;;  %v1542_v25 = vmin.f32 %v5000_v35, 0.0  ;;  %v5022_v10 = vmul.f32 %v4123_v32, %v3713_v8  ;;  %vm1534_vm7 = vcmp.gt.f32.partialorder %v5000_v35, 0.0 }
 0x5ce   :  { %v5007_v26 = vmul.f32 %v4111_v23, %v1496_v28  ;;  %v1540_v5 = vmin.f32 %v5011_v36, 0.0  ;;  %v4127_v23 = vpop.eup %4126  ;;  %vm1532_vm1 = vcmp.gt.f32.partialorder %v5011_v36, 0.0 }
 0x5cf   :  { %v1552_v31 = vmul.f32 1.442695, %v1542_v25  ;;  %v4129_v25 = vpop.eup %4128  ;;  %v1543_v40 = vmin.f32 %v5022_v10, 0.0 }
 0x5d0   :  { %v1541_v29 = vmin.f32 %v5007_v26, 0.0 }
 0x5d1   :  { %4138 = vpow2.f32 %v1552_v31 }
 0x5d2   :  { %v3716_v16 = vpop.f32.mrb[32].mxu0  ;;  %v1550_v13 = vmul.f32 1.442695, %v1541_v29 }
 0x5d3   :  { %v1509_v11 = vpop.f32.mrb[33].mxu0 }
 0x5d4   :  { %v5002_v0 = vpop.f32.mrb[34].mxu0  ;;  %v5027_v14 = vmul.f32 %v4125_v3, %v1509_v11  ;;  %v1548_v11 = vmul.f32 1.442695, %v1540_v5 }
 0x5d5   :  { %v5004_v37 = vpop.f32.mrb[35].mxu0 }
 0x5d6   :  { %v1544_v9 = vmin.f32 %v5027_v14, 0.0 }
 0x5d8   :  { %v3728_v33 = vpop.f32.mrb[20].mxu1 }
 0x5d9   :  { %v5009_v2 = vmul.f32 %v4115_v30, %v3728_v33  ;;  %v1766_v42 = vpop.f32.mrb[21].mxu1  ;;  %v1695_v33 = vpop.xlane.xlu0 %1694 }
 0x5da   :  { %v5013_v47 = vmul.f32 %v4117_v6, %v1766_v42  ;;  %v3729_v46 = vpop.f32.mrb[22].mxu1  ;;  %v5030_v6 = vmul.f32 %v4129_v25, %v3716_v16 }
 0x5db   :  { %v1815_v51 = vmin.f32 %v5009_v2, 0.0  ;;  %v5017_v54 = vmul.f32 %v4119_v43, %v3729_v46  ;;  %v1769_v38 = vpop.f32.mrb[23].mxu1  ;;  %v4131_v43 = vpop.eup %4130  ;;  %vm1807_vm3 = vcmp.gt.f32.partialorder %v5009_v2, 0.0 }
 0x5dc   :  { %v1813_v58 = vmin.f32 %v5013_v47, 0.0  ;;  %v5020_v41 = vmul.f32 %v4121_v52, %v1769_v38  ;;  %v4133_v29 = vpop.eup %4132  ;;  %v1546_v16 = vmin.f32 %v5030_v6, 0.0  ;;  %vm1805_vm6 = vcmp.gt.f32.partialorder %v5013_v47, 0.0 }
 0x5dd   :  { %v1825_v45 = vmul.f32 1.442695, %v1815_v51  ;;  %v1816_v34 = vmin.f32 %v5017_v54, 0.0  ;;  %v1554_v51 = vmul.f32 1.442695, %v1543_v40  ;;  %v4135_v38 = vpop.eup %4134  ;;  %v5040_v32 = vmul.f32 %v4133_v29, %v5004_v37 }
 0x5de   :  { %v1821_v1 = vmul.f32 1.442695, %v1813_v58  ;;  %v1814_v28 = vmin.f32 %v5020_v41, 0.0 }
 0x5df   :  { %4140 = vpow2.f32 %v1825_v45  ;;  %v1827_v22 = vmul.f32 1.442695, %v1816_v34  ;;  %v4137_v45 = vpop.eup %4136  ;;  %v1556_v34 = vmul.f32 1.442695, %v1544_v9  ;;  %v1545_v37 = vmin.f32 %v5040_v32, 0.0 }
 0x5e0   :  { %4142 = vpow2.f32 %v1821_v1  ;;  %v1823_v24 = vmul.f32 1.442695, %v1814_v28  ;;  %v3732_v8 = vpop.f32.mrb[24].mxu1  ;;  %v4139_v5 = vpop.eup %4138 }
 0x5e1   :  { %4144 = vpow2.f32 %v1827_v22  ;;  %v1782_v30 = vpop.f32.mrb[25].mxu1  ;;  %v5042_v3 = vmul.f32 %v4135_v38, %v3732_v8  ;;  %v1560_v22 = vmul.f32 1.442695, %v1546_v16 }
 0x5e2   :  { %v5032_v7 = vmul.f32 %v4127_v23, %v1782_v30  ;;  %v3733_v42 = vpop.f32.mrb[26].mxu1  ;;  %4146 = vpow2.f32 %v1550_v13  ;;  %v5046_v23 = vmul.f32 %v4137_v45, %v5002_v0 }
 0x5e3   :  { %v1785_v31 = vpop.f32.mrb[27].mxu1  ;;  %4148 = vpow2.f32 %v1823_v24  ;;  %v1819_v40 = vmin.f32 %v5042_v3, 0.0 }
 0x5e4   :  { %v1817_v46 = vmin.f32 %v5032_v7, 0.0  ;;  %v5036_v52 = vmul.f32 %v4131_v43, %v1785_v31  ;;  %4150 = vrcp.f32 %v1695_v33  ;;  %v3279_v43 = vadd.f32 -1.0, %v4139_v5 }
 0x5e5   :  { %4152 = vpow2.f32 %v1548_v11 }
 0x5e6   :  { %v1829_v58 = vmul.f32 1.442695, %v1817_v46  ;;  %v1818_v1 = vmin.f32 %v5036_v52, 0.0  ;;  %v1558_v46 = vmul.f32 1.442695, %v1545_v37  ;;  %v1574_v16 = vsel %vm1534_vm7, %v5000_v35, %v3279_v43 }
 0x5e7   :  { %vm1806_vm7 = vcmp.gt.f32.partialorder %v5020_v41, 0.0 }
 0x5e8   :  { %4154 = vpow2.f32 %v1829_v58  ;;  %v1831_v30 = vmul.f32 1.442695, %v1818_v1 }
 0x5e9   :  { %v4141_v28 = vpop.eup %4140  ;;  %4156 = vpow2.f32 %v1554_v51  ;;  %v1833_v51 = vmul.f32 1.442695, %v1819_v40 }
 0x5ea   :  { %v4143_v13 = vpop.eup %4142  ;;  %v3291_v24 = vadd.f32 -1.0, %v4141_v28  ;;  %4158 = vpow2.f32 %v1556_v34 }
 0x5eb   :  { %v4145_v25 = vpop.eup %4144  ;;  %v3289_v8 = vadd.f32 -1.0, %v4143_v13  ;;  %4160 = vpow2.f32 %v1560_v22 }
 0x5ec   :  { %v1847_v33 = vsel %vm1807_vm3, %v5009_v2, %v3291_v24  ;;  %v4147_v11 = vpop.eup %4146  ;;  %v3292_v9 = vadd.f32 -1.0, %v4145_v25  ;;  %v1547_v2 = vmin.f32 %v5046_v23, 0.0  ;;  %vm1808_vm3 = vcmp.gt.f32.partialorder %v5017_v54, 0.0 }
 0x5ed   :  { %1897 = vrot.lane.b32.xlu0 %v1847_v33, %s4336_s19  ;;  %v1845_v0 = vsel %vm1805_vm6, %v5013_v47, %v3289_v8  ;;  %v4149_v31 = vpop.eup %4148  ;;  %4162 = vpow2.f32 %v1831_v30  ;;  %v3278_v47 = vadd.f32 -1.0, %v4147_v11  ;;  %vm1533_vm6 = vcmp.gt.f32.partialorder %v5007_v26, 0.0 }
 0x5ee   :  { %1893 = vrot.lane.b32.xlu1 %v1845_v0, %s4336_s19  ;;  %v4151_v29 = vpop.eup %4150  ;;  %v1848_v45 = vsel %vm1808_vm3, %v5017_v54, %v3292_v9  ;;  %v3290_v34 = vadd.f32 -1.0, %v4149_v31  ;;  %4164 = vpow2.f32 %v1558_v46  ;;  %v1562_v28 = vmul.f32 1.442695, %v1547_v2 }
 0x5ef   :  { %v5059_v38 = vmul.f32 %v4151_v29, %v3733_v42  ;;  %v4153_v58 = vpop.eup %4152  ;;  %4166 = vpow2.f32 %v1833_v51  ;;  %v1573_v35 = vsel %vm1533_vm6, %v5007_v26, %v3278_v47  ;;  %vm1809_vm3 = vcmp.gt.f32.partialorder %v5032_v7, 0.0  ;;  %v1987_v47 = vld [vmem:[%s5486_s10 + $0x8] sm:$0xff] }
 0x5f0   :  { %v1846_v54 = vsel %vm1806_vm7, %v5020_v41, %v3290_v34  ;;  %v3277_v37 = vadd.f32 -1.0, %v4153_v58  ;;  %4168 = vpow2.f32 %v1562_v28  ;;  %vm1536_vm6 = vcmp.gt.f32.partialorder %v5027_v14, 0.0  ;;  %v1139_v34 = vpop.xlane.xlu0 %1138 }
 0x5f1   :  { %1865 = vrot.lane.b32.xlu0 %v1574_v16, %s4337_s7  ;;  %v1820_v42 = vmin.f32 %v5059_v38, 0.0  ;;  %vm1535_vm7 = vcmp.gt.f32.partialorder %v5022_v10, 0.0 }
 0x5f2   :  { %v4155_v5 = vpop.eup %4154  ;;  %1899 = vrot.lane.b32.xlu1 %v1848_v45, %s4336_s19  ;;  %v1572_v8 = vsel %vm1532_vm1, %v5011_v36, %v3277_v37  ;;  %vm1538_vm1 = vcmp.gt.f32.partialorder %v5030_v6, 0.0 }
 0x5f3   :  { %v4157_v1 = vpop.eup %4156  ;;  %v3293_v13 = vadd.f32 -1.0, %v4155_v5  ;;  %v1835_v24 = vmul.f32 1.442695, %v1820_v42 }
 0x5f4   :  { %v4159_v22 = vpop.eup %4158  ;;  %v3280_v30 = vadd.f32 -1.0, %v4157_v1  ;;  %v1145_v1 = vpop.xlane.xlu0 %1144 }
 0x5f5   :  { %1863 = vrot.lane.b32.xlu0 %v1573_v35, %s4337_s7  ;;  %v1849_v25 = vsel %vm1809_vm3, %v5032_v7, %v3293_v13  ;;  %v3281_v26 = vadd.f32 -1.0, %v4159_v22  ;;  %v4161_v40 = vpop.eup %4160  ;;  %4170 = vpow2.f32 %v1835_v24  ;;  %vm1810_vm3 = vcmp.gt.f32.partialorder %v5036_v52, 0.0 }
 0x5f6   :  { %1895 = vrot.lane.b32.xlu1 %v1846_v54, %s4336_s19  ;;  %v3283_v11 = vadd.f32 -1.0, %v4161_v40  ;;  %v1575_v0 = vsel %vm1535_vm7, %v5022_v10, %v3280_v30  ;;  %vm1537_vm7 = vcmp.gt.f32.partialorder %v5040_v32, 0.0 }
 0x5f7   :  { %v4163_v33 = vpop.eup %4162  ;;  %v1576_v43 = vsel %vm1536_vm6, %v5027_v14, %v3281_v26  ;;  %vm1811_vm6 = vcmp.gt.f32.partialorder %v5042_v3, 0.0 }
 0x5f8   :  { %v4165_v41 = vpop.eup %4164  ;;  %v3294_v9 = vadd.f32 -1.0, %v4163_v33  ;;  %v1578_v36 = vsel %vm1538_vm1, %v5030_v6, %v3283_v11  ;;  %vm1539_vm1 = vcmp.gt.f32.partialorder %v5046_v23, 0.0  ;;  %v1151_v37 = vpop.xlane.xlu0 %1150 }
 0x5f9   :  { %1901 = vrot.lane.b32.xlu0 %v1849_v25, %s4336_s19  ;;  %v4167_v7 = vpop.eup %4166  ;;  %v3282_v46 = vadd.f32 -1.0, %v4165_v41 }
 0x5fa   :  { %1861 = vrot.lane.b32.xlu1 %v1572_v8, %s4337_s7  ;;  %v3295_v31 = vadd.f32 -1.0, %v4167_v7  ;;  %v1850_v14 = vsel %vm1810_vm3, %v5036_v52, %v3294_v9  ;;  %v4169_v29 = vpop.eup %4168  ;;  %vm1812_vm3 = vcmp.gt.f32.partialorder %v5059_v38, 0.0 }
 0x5fb   :  { %v1577_v6 = vsel %vm1537_vm7, %v5040_v32, %v3282_v46  ;;  %v3284_v2 = vadd.f32 -1.0, %v4169_v29  ;;  %v1986_v32 = vld [vmem:[%s5486_s10] sm:$0xff] }
 0x5fc   :  { %v1851_v10 = vsel %vm1811_vm6, %v5042_v3, %v3295_v31  ;;  %v3962_v58 = vpack.c.bf16 %v1987_v47, %v1986_v32  ;;  %vm1917_vm6 = vcmask 64512  }
 0x5fd   :  { %1869 = vrot.lane.b32.xlu0 %v1576_v43, %s4337_s7  ;;  %v1579_v52 = vsel %vm1539_vm1, %v5046_v23, %v3284_v2  ;;  %v1988_v23 = vld [vmem:[%s5486_s10 + $0x10] sm:$0xff]  ;;  %v1157_v43 = vpop.xlane.xlu0 %1156  ;;  %vm1926_vm1 = vcmask 130048   ;;  %s4338_s10 = smov 104  }
 0x5fe   :  { %1867 = vrot.lane.b32.xlu1 %v1575_v0, %s4337_s7  ;;  %3963 = vmatprep.subr.bf16.mxu1 %v3962_v58 }
 0x5ff   :  { %v4171_v51 = vpop.eup %4170  ;;  %3965 = vmatpush3.bf16.msra.mxu1 %v3962_v58 }
 0x600   :  { %v3296_v16 = vadd.f32 -1.0, %v4171_v51  ;;  %3766 = vmatprep.subr.mxu1 %v1988_v23 }
 0x601   :  { %1873 = vrot.lane.b32.xlu0 %v1578_v36, %s4337_s7 }
 0x602   :  { %1903 = vrot.lane.b32.xlu1 %v1850_v14, %s4336_s19  ;;  %v1852_v3 = vsel %vm1812_vm3, %v5059_v38, %v3296_v16  ;;  %v1136_v38 = vpop.xlane.xlu1 %1135 }
 0x603   :  { %3767 = vmatpush3.msra.mxu1 %v1988_v23 }
 0x605   :  { %1905 = vrot.lane.b32.xlu0 %v1851_v10, %s4336_s19 }
 0x606   :  { %1871 = vrot.lane.b32.xlu1 %v1577_v6, %s4337_s7  ;;  %v1142_v45 = vpop.xlane.xlu1 %1141 }
 0x607   :  { %4172 = vrcp.f32 %v1142_v45 }
 0x608   :  { %4174 = vrcp.f32 %v1139_v34 }
 0x609   :  { %4176 = vrcp.f32 %v1136_v38 }
 0x60a   :  { %1875 = vrot.lane.b32.xlu1 %v1579_v52, %s4337_s7  ;;  %v1148_v28 = vpop.xlane.xlu1 %1147  ;;  %4178 = vrcp.f32 %v1145_v1 }
 0x60b   :  { %4180 = vrcp.f32 %v1148_v28 }
 0x60e   :  { %1907 = vrot.lane.b32.xlu1 %v1852_v3, %s4336_s19  ;;  %v1154_v54 = vpop.xlane.xlu1 %1153 }
 0x60f   :  { %4182 = vrcp.f32 %v1154_v54 }
 0x610   :  { %4184 = vrcp.f32 %v1151_v37 }
 0x611   :  { %v4173_v5 = vpop.eup %4172 }
 0x612   :  { %v1249_v42 = vmul.f32 %v4173_v5, %v4984_v4  ;;  %v4175_v35 = vpop.eup %4174 }
 0x613   :  { %v1248_v22 = vmul.f32 %v4175_v35, %v4990_v53  ;;  %v4177_v24 = vpop.eup %4176 }
 0x614   :  { %v1265_v13 = vmin.f32 %v1249_v42, 0.0  ;;  %v5114_v40 = vmul.f32 %v4177_v24, %v4986_v55  ;;  %v4179_v8 = vpop.eup %4178  ;;  %vm1257_vm7 = vcmp.gt.f32.partialorder %v1249_v42, 0.0 }
 0x615   :  { %v1264_v26 = vmin.f32 %v1248_v22, 0.0  ;;  %v4181_v30 = vpop.eup %4180  ;;  %v5121_v53 = vmul.f32 %v4179_v8, %v4988_v49  ;;  %vm1256_vm3 = vcmp.gt.f32.partialorder %v1248_v22, 0.0 }
 0x616   :  { %v1275_v25 = vmul.f32 1.442695, %v1265_v13  ;;  %v5117_v4 = vmul.f32 %v4181_v30, %v4994_v59  ;;  %v1263_v41 = vmin.f32 %v5114_v40, 0.0 }
 0x617   :  { %v1273_v33 = vmul.f32 1.442695, %v1264_v26  ;;  %v1266_v55 = vmin.f32 %v5121_v53, 0.0  ;;  %vm1258_vm15 = vcmp.gt.f32.partialorder %v5121_v53, 0.0 }
 0x618   :  { %4186 = vpow2.f32 %v1275_v25  ;;  %v1267_v11 = vmin.f32 %v5117_v4, 0.0  ;;  %v1271_v7 = vmul.f32 1.442695, %v1263_v41 }
 0x619   :  { %4188 = vpow2.f32 %v1273_v33  ;;  %v4183_v0 = vpop.eup %4182  ;;  %v1277_v31 = vmul.f32 1.442695, %v1266_v55 }
 0x61a   :  { %4190 = vrcp.f32 %v1157_v43  ;;  %v5126_v9 = vmul.f32 %v4183_v0, %v4992_v57  ;;  %v4185_v36 = vpop.eup %4184  ;;  %v1279_v59 = vmul.f32 1.442695, %v1267_v11 }
 0x61b   :  { %4192 = vpow2.f32 %v1271_v7  ;;  %v5129_v14 = vmul.f32 %v4185_v36, %v4998_v63 }
 0x61c   :  { %v1269_v46 = vmin.f32 %v5126_v9, 0.0  ;;  %4194 = vpow2.f32 %v1279_v59 }
 0x61d   :  { %4196 = vpow2.f32 %v1277_v31  ;;  %v1268_v29 = vmin.f32 %v5129_v14, 0.0 }
 0x61e   :  { %v1283_v52 = vmul.f32 1.442695, %v1269_v46 }
 0x61f   :  { %v1281_v63 = vmul.f32 1.442695, %v1268_v29 }
 0x620   :  { %4198 = vpow2.f32 %v1283_v52 }
 0x621   :  { %4200 = vpow2.f32 %v1281_v63 }
 0x622   :  { %v4187_v49 = vpop.eup %4186 }
 0x623   :  { %v3267_v6 = vadd.f32 -1.0, %v4187_v49  ;;  %v4189_v2 = vpop.eup %4188 }
 0x624   :  { %v4191_v57 = vpop.eup %4190  ;;  %v3266_v47 = vadd.f32 -1.0, %v4189_v2 }
 0x625   :  { %v5134_v16 = vmul.f32 %v4191_v57, %v4996_v61  ;;  %v1297_v3 = vsel %vm1257_vm7, %v1249_v42, %v3267_v6  ;;  %v4193_v38 = vpop.eup %4192  ;;  %vm1255_vm7 = vcmp.gt.f32.partialorder %v5114_v40, 0.0 }
 0x626   :  { %v1296_v5 = vsel %vm1256_vm3, %v1248_v22, %v3266_v47  ;;  %v4195_v1 = vpop.eup %4194  ;;  %v3265_v35 = vadd.f32 -1.0, %v4193_v38  ;;  %vm1259_vm3 = vcmp.gt.f32.partialorder %v5117_v4, 0.0 }
 0x627   :  { %v1270_v45 = vmin.f32 %v5134_v16, 0.0  ;;  %v4197_v13 = vpop.eup %4196  ;;  %v3269_v8 = vadd.f32 -1.0, %v4195_v1 }
 0x628   :  { %v1295_v30 = vsel %vm1255_vm7, %v5114_v40, %v3265_v35  ;;  %v3268_v41 = vadd.f32 -1.0, %v4197_v13  ;;  %vm1260_vm7 = vcmp.gt.f32.partialorder %v5129_v14, 0.0 }
 0x629   :  { %v1285_v37 = vmul.f32 1.442695, %v1270_v45  ;;  %v1299_v36 = vsel %vm1259_vm3, %v5117_v4, %v3269_v8  ;;  %vm1262_vm3 = vcmp.gt.f32.partialorder %v5134_v16, 0.0 }
 0x62a   :  { %v4199_v55 = vpop.eup %4198  ;;  %v1298_v31 = vsel %vm1258_vm15, %v5121_v53, %v3268_v41  ;;  %vm1261_vm15 = vcmp.gt.f32.partialorder %v5126_v9, 0.0 }
 0x62b   :  { %4202 = vpow2.f32 %v1285_v37  ;;  %v4201_v46 = vpop.eup %4200 }
 0x635   :  { %v4203_v38 = vpop.eup %4202 }
 0x636   :  { %v3272_v13 = vadd.f32 -1.0, %v4203_v38  ;;  %v4274_v38 = vld [vmem:[%s5502_s24 + $0x20] sm:$0xff] }
 0x65f   :  { %v1898_v10 = vpop.permute.xlu0 %1897 }
 0x660   :  { %v1894_v51 = vpop.permute.xlu1 %1893 }
 0x663   :  { %v1866_v32 = vpop.permute.xlu0 %1865 }
 0x664   :  { %v1920_v58 = vsel %vm1917_vm6, %v1297_v3, %v1866_v32  ;;  %v1900_v23 = vpop.permute.xlu1 %1899  ;;  %v3270_v3 = vadd.f32 -1.0, %v4201_v46 }
 0x665   :  { %v5139_v34 = vsel %vm1926_vm1, %v1920_v58, %v1898_v10 }
 0x666   :  { %v1945_v24 = vmin.f32 %v5139_v34, 0.0 }
 0x667   :  { %v1864_v61 = vpop.permute.xlu0 %1863 }
 0x668   :  { %v1919_v28 = vsel %vm1917_vm6, %v1296_v5, %v1864_v61  ;;  %v1896_v42 = vpop.permute.xlu1 %1895  ;;  %v1955_v11 = vmul.f32 1.442695, %v1945_v24  ;;  %v1300_v61 = vsel %vm1260_vm7, %v5129_v14, %v3270_v3  ;;  %v1302_v14 = vsel %vm1262_vm3, %v5134_v16, %v3272_v13  ;;  %v1985_v13 = vld [vmem:[%s5485_s9 + $0x10] sm:$0xff] }
 0x669   :  { %v5143_v54 = vsel %vm1926_vm1, %v1919_v28, %v1896_v42  ;;  %vm1937_vm3 = vcmp.gt.f32.partialorder %v5139_v34, 0.0 }
 0x66a   :  { %v1944_v25 = vmin.f32 %v5143_v54, 0.0 }
 0x66b   :  { %v1902_v26 = vpop.permute.xlu0 %1901 }
 0x66c   :  { %v1953_v22 = vmul.f32 1.442695, %v1944_v25  ;;  %v1862_v33 = vpop.permute.xlu1 %1861 }
 0x66d   :  { %v1918_v43 = vsel %vm1917_vm6, %v1295_v30, %v1862_v33 }
 0x66e   :  { %v1927_v7 = vsel %vm1926_vm1, %v1918_v43, %v1894_v51  ;;  %4204 = vpow2.f32 %v1953_v22  ;;  %v3271_v51 = vadd.f32 -1.0, %v4199_v55 }
 0x66f   :  { %v1943_v0 = vmin.f32 %v1927_v7, 0.0  ;;  %v1870_v59 = vpop.permute.xlu0 %1869  ;;  %4206 = vpow2.f32 %v1955_v11  ;;  %vm1935_vm7 = vcmp.gt.f32.partialorder %v1927_v7, 0.0 }
 0x670   :  { %v1922_v40 = vsel %vm1917_vm6, %v1299_v36, %v1870_v59  ;;  %v1868_v49 = vpop.permute.xlu1 %1867  ;;  %v1301_v32 = vsel %vm1261_vm15, %v5126_v9, %v3271_v51  ;;  %vm1936_vm15 = vcmp.gt.f32.partialorder %v5143_v54, 0.0 }
 0x671   :  { %v1951_v29 = vmul.f32 1.442695, %v1943_v0  ;;  %v5157_v10 = vsel %vm1926_vm1, %v1922_v40, %v1902_v26  ;;  %v1921_v6 = vsel %vm1917_vm6, %v1298_v31, %v1868_v49 }
 0x672   :  { %v1930_v2 = vsel %vm1926_vm1, %v1921_v6, %v1900_v23  ;;  %v1947_v4 = vmin.f32 %v5157_v10, 0.0 }
 0x673   :  { %4208 = vpow2.f32 %v1951_v29  ;;  %v1946_v57 = vmin.f32 %v1930_v2, 0.0  ;;  %v1874_v52 = vpop.permute.xlu0 %1873  ;;  %vm1938_vm14 = vcmp.gt.f32.partialorder %v1930_v2, 0.0 }
 0x674   :  { %v1904_v63 = vpop.permute.xlu1 %1903  ;;  %v1959_v47 = vmul.f32 1.442695, %v1947_v4  ;;  %v1924_v58 = vsel %vm1917_vm6, %v1301_v32, %v1874_v52 }
 0x675   :  { %v1957_v53 = vmul.f32 1.442695, %v1946_v57 }
 0x677   :  { %4210 = vpow2.f32 %v1957_v53  ;;  %v1906_v23 = vpop.permute.xlu0 %1905 }
 0x678   :  { %v1933_v45 = vsel %vm1926_vm1, %v1924_v58, %v1906_v23  ;;  %v1872_v5 = vpop.permute.xlu1 %1871  ;;  %v4205_v1 = vpop.eup %4204  ;;  %4212 = vpow2.f32 %v1959_v47  ;;  %v4271_v47 = vld [vmem:[%s5502_s24 + $0x8] sm:$0xff]  ;;  %v4272_v58 = vld [vmem:[%s5502_s24 + $0x10] sm:$0xff]  ;;  %v4273_v23 = vld [vmem:[%s5502_s24 + $0x18] sm:$0xff] }
 0x679   :  { %v1923_v28 = vsel %vm1917_vm6, %v1300_v61, %v1872_v5  ;;  %v1949_v42 = vmin.f32 %v1933_v45, 0.0  ;;  %v4207_v37 = vpop.eup %4206  ;;  %v3298_v24 = vadd.f32 -1.0, %v4205_v1  ;;  %v4276_v5 = vld [vmem:[%s5502_s24 + $0x30] sm:$0xff]  ;;  %v4277_v61 = vld [vmem:[%s5502_s24 + $0x38] sm:$0xff]  ;;  %v1983_v1 = vld [vmem:[%s5485_s9] sm:$0xff] }
 0x67a   :  { %v1932_v35 = vsel %vm1926_vm1, %v1923_v28, %v1904_v63  ;;  %v3299_v33 = vadd.f32 -1.0, %v4207_v37  ;;  %v1984_v28 = vld [vmem:[%s5485_s9 + $0x8] sm:$0xff] }
 0x67b   :  { %v1948_v9 = vmin.f32 %v1932_v35, 0.0  ;;  %v1963_v30 = vmul.f32 1.442695, %v1949_v42  ;;  %v5174_v41 = vsel %vm1936_vm15, %v5143_v54, %v3298_v24  ;;  %vm1940_vm15 = vcmp.gt.f32.partialorder %v1932_v35, 0.0 }
 0x67c   :  { %v1876_v25 = vpop.permute.xlu1 %1875  ;;  %v5184_v16 = vsel %vm1937_vm3, %v5139_v34, %v3299_v33  ;;  %v3966_v42 = vpack.c.bf16 %v1984_v28, %v1983_v1  ;;  %vm2590_vm3 = vcmask 1043456  }
 0x67d   :  { %v4209_v26 = vpop.eup %4208  ;;  %v1961_v8 = vmul.f32 1.442695, %v1948_v9  ;;  %v1925_v11 = vsel %vm1917_vm6, %v1302_v14, %v1876_v25  ;;  %v2560_v14 = vld [vmem:[%s5488_s12 + $0x8] sm:$0xff] }
 0x67e   :  { %v3297_v22 = vadd.f32 -1.0, %v4209_v26  ;;  %3967 = vmatprep.subr.bf16.mxu1 %v3966_v42 }
 0x67f   :  { %4214 = vpow2.f32 %v1961_v8 }
 0x680   :  { %v5176_v43 = vsel %vm1935_vm7, %v1927_v7, %v3297_v22  ;;  %v1908_v55 = vpop.permute.xlu1 %1907  ;;  %4216 = vpow2.f32 %v1963_v30  ;;  %v2559_v30 = vld [vmem:[%s5488_s12] sm:$0xff] }
 0x681   :  { %v4211_v0 = vpop.eup %4210  ;;  %v1934_v36 = vsel %vm1926_vm1, %v1925_v11, %v1908_v55  ;;  %v3946_v59 = vpack.c.bf16 %v5174_v41, %v5176_v43  ;;  %vm1939_vm1 = vcmp.gt.f32.partialorder %v5157_v10, 0.0  ;;  %v2576_v33 = vpack.c.bf16 %v2560_v14, %v2559_v30 }
 0x682   :  { %v3300_v40 = vadd.f32 -1.0, %v4211_v0  ;;  %v1950_v31 = vmin.f32 %v1934_v36, 0.0  ;;  %v4213_v49 = vpop.eup %4212  ;;  %vm1942_vm7 = vcmp.gt.f32.partialorder %v1934_v36, 0.0 }
 0x683   :  { %3947 = vmatprep.subr.bf16.mxu0 %v3946_v59  ;;  %v3301_v29 = vadd.f32 -1.0, %v4213_v49 }
 0x684   :  { %v5186_v54 = vsel %vm1938_vm14, %v1930_v2, %v3300_v40  ;;  %v1965_v7 = vmul.f32 1.442695, %v1950_v31  ;;  %3949 = vmatpush3.bf16.msra.mxu0 %v3946_v59  ;;  %vm1941_vm14 = vcmp.gt.f32.partialorder %v1933_v45, 0.0 }
 0x685   :  { %v3950_v46 = vpack.c.bf16 %v5186_v54, %v5184_v16  ;;  %v5192_v34 = vsel %vm1939_vm1, %v5157_v10, %v3301_v29 }
 0x686   :  { %4218 = vpow2.f32 %v1965_v7 }
 0x687   :  { %3951 = vmatprep.subr.bf16.mxu0 %v3950_v46 }
 0x688   :  { %3953 = vmatpush3.bf16.msra.mxu0 %v3950_v46  ;;  %v2561_v46 = vld [vmem:[%s5488_s12 + $0x10] sm:$0xff] }
 0x689   :  { %v4215_v6 = vpop.eup %4214 }
 0x68a   :  { %v3302_v51 = vadd.f32 -1.0, %v4215_v6  ;;  %v4217_v4 = vpop.eup %4216  ;;  %v2577_v6 = vpack.c.bf16 %v2561_v46, %v2561_v46 }
 0x68b   :  { %v3303_v52 = vadd.f32 -1.0, %v4217_v4 }
 0x68c   :  { %v5194_v2 = vsel %vm1940_vm15, %v1932_v35, %v3302_v51 }
 0x68d   :  { %v3954_v57 = vpack.c.bf16 %v5194_v2, %v5192_v34  ;;  %v5198_v53 = vsel %vm1941_vm14, %v1933_v45, %v3303_v52  ;;  %v4275_v45 = vld [vmem:[%s5502_s24 + $0x28] sm:$0xff]  ;;  %v2592_v52 = vsel %vm2590_vm3, %v2577_v6, 0 }
 0x68f   :  { %3955 = vmatprep.subr.bf16.mxu0 %v3954_v57 }
 0x690   :  { %v4219_v63 = vpop.eup %4218  ;;  %3957 = vmatpush3.bf16.msra.mxu0 %v3954_v57 }
 0x691   :  { %v3304_v3 = vadd.f32 -1.0, %v4219_v63 }
 0x693   :  { %v5200_v32 = vsel %vm1942_vm7, %v1934_v36, %v3304_v3 }
 0x694   :  { %v3958_v10 = vpack.c.bf16 %v5200_v32, %v5198_v53 }
 0x696   :  { %3959 = vmatprep.subr.bf16.mxu0 %v3958_v10 }
 0x697   :  { %3961 = vmatpush3.bf16.msra.mxu0 %v3958_v10 }
 0x698   :  { %3970 = vmatprep.subr.bf16.mxu0 %v4327_v56 }
 0x69a   :  { %3751 = vmatmul.mubr.msk.f32.vlgmr.msra.gmra.mrb[18].mxu0 %vm97_vm0, %v4271_v47 }
 0x69b   :  { %3753 = vmatprep.mubr.msk.f32.mxu0 %vm97_vm0, %v4272_v58 }
 0x69e   :  { %3754 = vmatmul.mubr.msk.f32.gmra.mrb[36].mxu0 %vm97_vm0, %v4273_v23 }
 0x69f   :  { %3756 = vmatprep.mubr.msk.f32.mxu0 %vm97_vm0, %v4274_v38 }
 0x6a2   :  { %3757 = vmatmul.mubr.msk.f32.gmra.mrb[38].mxu0 %vm97_vm0, %v4275_v45 }
 0x6a3   :  { %3759 = vmatprep.mubr.msk.f32.mxu0 %vm97_vm0, %v4276_v5 }
 0x6a6   :  { %3760 = vmatmul.mubr.msk.f32.gmra.mrb[40].mxu0 %vm97_vm0, %v4277_v61 }
 0x6a7   :  { %3814 = vmatprep.mubr.msk.f32.mxu0 %vm4328_vm2, %v4329_v15 }
 0x76d   :  { %v5241_v35 = vpop.f32.mrb[18].mxu0 }
 0x76e   :  { %v5243_v9 = vpop.f32.mrb[19].mxu0 }
 0x76f   :  { %3768 = vmatprep.mubr.msk.f32.mxu1 %vm795_vm4, %v5243_v9 }
 0x770   :  { %3769 = vmatmul.mubr.msk.f32.vlgmr.msra.gmra.mrb[18].mxu1 %vm795_vm4, %v5241_v35 }
 0x771   :  { %v5252_v37 = vpop.f32.mrb[36].mxu0  ;;  %3969 = vmatpush3.bf16.msra.mxu1 %v3966_v42 }
 0x772   :  { %v5254_v24 = vpop.f32.mrb[37].mxu0  ;;  %3784 = vmatprep.subr.mxu1 %v1985_v13 }
 0x773   :  { %3771 = vmatprep.mubr.msk.f32.mxu1 %vm795_vm4, %v5254_v24 }
 0x774   :  { %3772 = vmatmul.mubr.msk.f32.gmra.mrb[28].mxu1 %vm795_vm4, %v5252_v37 }
 0x775   :  { %v5260_v25 = vpop.f32.mrb[38].mxu0  ;;  %3785 = vmatpush3.msra.mxu1 %v1985_v13  ;;  %v3329_v13 = vld [vmem:[%s5487_s11] ss:$0 sm:$0xff] }
 0x776   :  { %v5262_v26 = vpop.f32.mrb[39].mxu0  ;;  %3817 = vmatprep.subr.bf16.mxu1 %v2576_v33 }
 0x777   :  { %3774 = vmatprep.mubr.msk.f32.mxu1 %vm795_vm4, %v5262_v26 }
 0x778   :  { %3775 = vmatmul.mubr.msk.f32.gmra.mrb[30].mxu1 %vm795_vm4, %v5260_v25 }
 0x779   :  { %v5268_v8 = vpop.f32.mrb[40].mxu0 }
 0x77a   :  { %v5270_v22 = vpop.f32.mrb[41].mxu0 }
 0x77b   :  { %3777 = vmatprep.mubr.msk.f32.mxu1 %vm795_vm4, %v5270_v22 }
 0x77c   :  { %3778 = vmatmul.mubr.msk.f32.gmra.mrb[32].mxu1 %vm795_vm4, %v5268_v8 }
 0x77d   :  { %3786 = vmatprep.mubr.msk.f32.mxu1 %vm795_vm4, %v5176_v43 }
 0x780   :  { %3787 = vmatmul.mubr.msk.f32.vlgmr.msra.gmra.mrb[18].mxu1 %vm795_vm4, %v5174_v41 }
 0x781   :  { %3789 = vmatprep.mubr.msk.f32.mxu1 %vm795_vm4, %v5184_v16  ;;  %3818 = vmatpush3.bf16.msra.mxu1 %v2576_v33 }
 0x782   :  { %4018 = vmatprep.subr.msk.bf16.mxu1 %vm2590_vm3, %v2577_v6 }
 0x784   :  { %3790 = vmatmul.mubr.msk.f32.gmra.mrb[28].mxu1 %vm795_vm4, %v5186_v54 }
 0x785   :  { %3792 = vmatprep.mubr.msk.f32.mxu1 %vm795_vm4, %v5192_v34  ;;  %3820 = vmatpush3.bf16.msra.mxu1 %v2592_v52 }
 0x786   :  { %3986 = vmatprep.subr.bf16.mxu1 %v4327_v56 }
 0x788   :  { %3793 = vmatmul.mubr.msk.f32.gmra.mrb[30].mxu1 %vm795_vm4, %v5194_v2 }
 0x789   :  { %3795 = vmatprep.mubr.msk.f32.mxu1 %vm795_vm4, %v5198_v53 }
 0x78c   :  { %3796 = vmatmul.mubr.msk.f32.gmra.mrb[32].mxu1 %vm795_vm4, %v5200_v32 }
 0x853   :  { %v3788_v11 = vpop.f32.mrb[18].mxu1 }
 0x854   :  { %v2354_v55 = vmul.f32 0.2, %v3788_v11  ;;  %v2314_v0 = vpop.f32.mrb[19].mxu1 }
 0x855   :  { %v2353_v36 = vmul.f32 0.2, %v2314_v0 }
 0x856   :  { %v2362_v59 = vmax.f32 %v3788_v11, %v2354_v55 }
 0x857   :  { %v2361_v40 = vmax.f32 %v2314_v0, %v2353_v36  ;;  %v3791_v31 = vpop.f32.mrb[28].mxu1 }
 0x858   :  { %v2356_v7 = vmul.f32 0.2, %v3791_v31  ;;  %2401 = vrot.lane.b32.xlu1 %v2362_v59, %s4338_s10  ;;  %v2324_v49 = vpop.f32.mrb[29].mxu1  ;;  %v2370_v28 = vadd.f32 1.0, %v2362_v59 }
 0x859   :  { %v2355_v29 = vmul.f32 0.2, %v2324_v49  ;;  %2399 = vrot.lane.b32.xlu0 %v2361_v40, %s4338_s10  ;;  %v2369_v42 = vadd.f32 1.0, %v2361_v40 }
 0x85a   :  { %v2364_v51 = vmax.f32 %v3791_v31, %v2356_v7  ;;  %v2384_v14 = vmul.f32 %v3329_v13, %v2370_v28 }
 0x85b   :  { %v2363_v4 = vmax.f32 %v2324_v49, %v2355_v29  ;;  %v3794_v57 = vpop.f32.mrb[30].mxu1  ;;  %v2383_v55 = vmul.f32 %v3329_v13, %v2369_v42 }
 0x85c   :  { %v2358_v63 = vmul.f32 0.2, %v3794_v57  ;;  %2405 = vrot.lane.b32.xlu1 %v2364_v51, %s4338_s10  ;;  %v2334_v3 = vpop.f32.mrb[31].mxu1  ;;  %v2372_v30 = vadd.f32 1.0, %v2364_v51 }
 0x85d   :  { %v2357_v10 = vmul.f32 0.2, %v2334_v3  ;;  %2403 = vrot.lane.b32.xlu0 %v2363_v4, %s4338_s10  ;;  %v2371_v33 = vadd.f32 1.0, %v2363_v4 }
 0x85e   :  { %v2366_v47 = vmax.f32 %v3794_v57, %v2358_v63  ;;  %v2386_v46 = vmul.f32 %v3329_v13, %v2372_v30 }
 0x85f   :  { %v2365_v58 = vmax.f32 %v2334_v3, %v2357_v10  ;;  %v3797_v23 = vpop.f32.mrb[32].mxu1  ;;  %v2385_v6 = vmul.f32 %v3329_v13, %v2371_v33 }
 0x860   :  { %v2360_v38 = vmul.f32 0.2, %v3797_v23  ;;  %2409 = vrot.lane.b32.xlu1 %v2366_v47, %s4338_s10  ;;  %v2344_v45 = vpop.f32.mrb[33].mxu1  ;;  %v2374_v31 = vadd.f32 1.0, %v2366_v47 }
 0x861   :  { %v2359_v5 = vmul.f32 0.2, %v2344_v45  ;;  %2407 = vrot.lane.b32.xlu0 %v2365_v58, %s4338_s10  ;;  %v2373_v29 = vadd.f32 1.0, %v2365_v58 }
 0x862   :  { %v2368_v61 = vmax.f32 %v3797_v23, %v2360_v38  ;;  %v2388_v10 = vmul.f32 %v3329_v13, %v2374_v31 }
 0x863   :  { %v2367_v1 = vmax.f32 %v2344_v45, %v2359_v5  ;;  %v2387_v42 = vmul.f32 %v3329_v13, %v2373_v29 }
 0x864   :  { %2413 = vrot.lane.b32.xlu1 %v2368_v61, %s4338_s10  ;;  %v2376_v57 = vadd.f32 1.0, %v2368_v61 }
 0x865   :  { %2411 = vrot.lane.b32.xlu0 %v2367_v1, %s4338_s10  ;;  %v2375_v23 = vadd.f32 1.0, %v2367_v1 }
 0x8ca   :  { %v2402_v11 = vpop.permute.xlu1 %2401 }
 0x8cb   :  { %v2424_v0 = vadd.f32 %v2402_v11, %v2384_v14  ;;  %v2400_v36 = vpop.permute.xlu0 %2399 }
 0x8cc   :  { %v2423_v7 = vadd.f32 %v2400_v36, %v2383_v55 }
 0x8cd   :  { %v2432_v49 = vadd.f32 %v2424_v0, %v5174_v41 }
 0x8ce   :  { %v2431_v59 = vadd.f32 %v2423_v7, %v5176_v43  ;;  %v2406_v40 = vpop.permute.xlu1 %2405 }
 0x8cf   :  { %v2440_v52 = vsub.f32 %v2432_v49, %v5241_v35  ;;  %v2426_v51 = vadd.f32 %v2406_v40, %v2386_v46  ;;  %v2404_v63 = vpop.permute.xlu0 %2403 }
 0x8d0   :  { %v2439_v4 = vsub.f32 %v2431_v59, %v5243_v9  ;;  %v2425_v3 = vadd.f32 %v2404_v63, %v2385_v6  ;;  %v2390_v9 = vmul.f32 %v3329_v13, %v2376_v57 }
 0x8d1   :  { %v2448_v47 = vmul.f32 %v2440_v52, %v2440_v52  ;;  %v2565_v38 = vadd.f32 %v2440_v52, %v5174_v41  ;;  %v2434_v45 = vadd.f32 %v2426_v51, %v5186_v54 }
 0x8d2   :  { %v2447_v58 = vmul.f32 %v2439_v4, %v2439_v4  ;;  %v2564_v5 = vadd.f32 %v2439_v4, %v5176_v43  ;;  %v2433_v28 = vadd.f32 %v2425_v3, %v5184_v16  ;;  %v2410_v61 = vpop.permute.xlu1 %2409  ;;  %v2389_v43 = vmul.f32 %v3329_v13, %v2375_v23 }
 0x8d3   :  { %v2442_v35 = vsub.f32 %v2434_v45, %v5252_v37  ;;  %v2428_v30 = vadd.f32 %v2410_v61, %v2388_v10  ;;  %v2408_v14 = vpop.permute.xlu0 %2407 }
 0x8d4   :  { %v3971_v33 = vpack.c.bf16 %v2448_v47, %v2447_v58  ;;  %v2441_v1 = vsub.f32 %v2433_v28, %v5254_v24  ;;  %v2427_v11 = vadd.f32 %v2408_v14, %v2387_v42  ;;  %v2572_v55 = vpack.c.bf16 %v2565_v38, %v2564_v5 }
 0x8d5   :  { %v2450_v41 = vmul.f32 %v2442_v35, %v2442_v35  ;;  %v2567_v0 = vadd.f32 %v2442_v35, %v5186_v54  ;;  %v2436_v36 = vadd.f32 %v2428_v30, %v5194_v2 }
 0x8d6   :  { %v2449_v31 = vmul.f32 %v2441_v1, %v2441_v1  ;;  %v2566_v7 = vadd.f32 %v2441_v1, %v5184_v16  ;;  %v2435_v49 = vadd.f32 %v2427_v11, %v5192_v34  ;;  %3973 = vmatpush3.bf16.xpose.msk.msra.mxu0 %vm4675_vm5, %v3971_v33  ;;  %3821 = vmatprep.mubr.msk.bf16.mxu1 %vm795_vm4, %v2572_v55  ;;  %v2414_v37 = vpop.permute.xlu1 %2413 }
 0x8d7   :  { %v2444_v24 = vsub.f32 %v2436_v36, %v5260_v25  ;;  %v2430_v46 = vadd.f32 %v2414_v37, %v2390_v9  ;;  %v2412_v29 = vpop.permute.xlu0 %2411  ;;  %3974 = vmatprep.subr.bf16.mxu0 %v4327_v56 }
 0x8d8   :  { %v3975_v54 = vpack.c.bf16 %v2450_v41, %v2449_v31  ;;  %v2573_v59 = vpack.c.bf16 %v2567_v0, %v2566_v7  ;;  %v2443_v13 = vsub.f32 %v2435_v49, %v5262_v26  ;;  %v2429_v40 = vadd.f32 %v2412_v29, %v2389_v43 }
 0x8d9   :  { %v2452_v16 = vmul.f32 %v2444_v24, %v2444_v24  ;;  %v2569_v6 = vadd.f32 %v2444_v24, %v5194_v2  ;;  %v2438_v57 = vadd.f32 %v2430_v46, %v5200_v32 }
 0x8da   :  { %v2451_v52 = vmul.f32 %v2443_v13, %v2443_v13  ;;  %v2568_v51 = vadd.f32 %v2443_v13, %v5192_v34  ;;  %v2437_v63 = vadd.f32 %v2429_v40, %v5198_v53  ;;  %3822 = vmatmul.mubr.msk.bf16.vlgmr.msra.gmra.mrb[36].mxu1 %vm795_vm4, %v2573_v59 }
 0x8db   :  { %v2446_v25 = vsub.f32 %v2438_v57, %v5268_v8 }
 0x8dc   :  { %v3979_v4 = vpack.c.bf16 %v2452_v16, %v2451_v52  ;;  %v2445_v3 = vsub.f32 %v2437_v63, %v5270_v22  ;;  %v2574_v10 = vpack.c.bf16 %v2569_v6, %v2568_v51 }
 0x8dd   :  { %v2454_v26 = vmul.f32 %v2446_v25, %v2446_v25  ;;  %v2571_v23 = vadd.f32 %v2446_v25, %v5200_v32 }
 0x8de   :  { %v2453_v47 = vmul.f32 %v2445_v3, %v2445_v3  ;;  %v2570_v2 = vadd.f32 %v2445_v3, %v5198_v53  ;;  %3977 = vmatpush3.bf16.xpose.msk.msra.mxu0 %vm4675_vm5, %v3975_v54  ;;  %3825 = vmatprep.mubr.msk.bf16.mxu1 %vm795_vm4, %v2574_v10  ;;  %v2562_v53 = vld [vmem:[%s5489_s13] sm:$0xff]  ;;  %s4339_s13 = smov [#allocation2]  }
 0x8df   :  { %3978 = vmatprep.subr.bf16.mxu0 %v4327_v56 }
 0x8e0   :  { %v3983_v34 = vpack.c.bf16 %v2454_v26, %v2453_v47  ;;  %v2575_v38 = vpack.c.bf16 %v2571_v23, %v2570_v2 }
 0x8e2   :  { %3826 = vmatmul.mubr.msk.bf16.gmra.mrb[40].mxu1 %vm795_vm4, %v2575_v38 }
 0x8e3   :  { %3859 = vmatprep.mubr.msk.f32.mxu1 %vm4328_vm2, %v4329_v15  ;;  %v2563_v15 = vld [vmem:[%s5490_s14] sm:$0xff]  ;;  %vm5366_vm2 = vmpackc.low %vm1917_vm6, %vm1917_vm6  ;;  %s3182_s14 = sshll.u32 %s4339_s13, 4  ;;  %s3183_s14 = int_to_ptr.vmem [resolvable:$true] %s3182_s14 }
 0x8e4   :  { %2788 = vxpose.xlu0.b32.start.end [1/1] (short) (narrow) %v2563_v15, 8  ;;  %s4278_s3 = scalar_lea.vmem %s3183_s14, 16  ;;  %s4282_s0 = scalar_lea.vmem %s3183_s14, 32 }
 0x8e5   :  { %p4279_p0 = scmp.ne.s32.totalorder %s3183_s14, %s4278_s3  ;;  %p4283_p1 = scmp.lt.s32.totalorder %s3183_s14, %s3183_s14 }
 0x8e6   :  { %3981 = vmatpush3.bf16.xpose.msk.msra.mxu0 %vm4675_vm5, %v3979_v4  ;;  %p4284_p2 = scmp.lt.s32.totalorder %s4282_s0, %s4278_s3 }
 0x8e7   :  { %3982 = vmatprep.subr.bf16.mxu0 %v4327_v56 }
 0x8e8   :  { %p4285_p3 = por %p4284_p2, %p4283_p1 }
 0x8ea   :  { %p4286_p4 = pnand %p4285_p3, %p4279_p0 }
 0x8ee   :  { %3985 = vmatpush3.bf16.xpose.msk.msra.mxu0 %vm4675_vm5, %v3983_v34 }
 0x8ef   :  { %3829 = vmatprep.subr.mxu0 %v2562_v53 }
 0x8f5   :  { %3815 = vmatmul.mubr.msk.f32.vlgmr.msra.gmra.mrb[42].mxu0 %vm795_vm4, %v4330_v39 }
 0x8f6   :  { %3830 = vmatpush3.msra.mxu0 %v2562_v53 }
 0x90d   :  { %4057 = vset.pattern.permute.xlu0 %v4331_v44 }
 0x964   :  { %v2804_v9 = vpop.trf.xlu0 }
 0x9ad   :  { %v3823_v32 = vpop.f32.mrb[36].mxu1 }
 0x9ae   :  { %v2628_v8 = vpop.f32.mrb[37].mxu1 }
 0x9af   :  { %v3824_v50 = vpop.f32.mrb[38].mxu1  ;;  %3831 = vmatprep.mubr.msk.f32.mxu0 %vm1917_vm6, %v2628_v8 }
 0x9b0   :  { %v3991_v22 = vpack.c.bf16 %v3824_v50, %v3823_v32  ;;  %v2631_v39 = vpop.f32.mrb[39].mxu1 }
 0x9b1   :  { %v3987_v58 = vpack.c.bf16 %v2631_v39, %v2628_v8  ;;  %3832 = vmatmul.mubr.msk.f32.vlgmr.msra.gmra.mrb[44].mxu0 %vm1917_vm6, %v2631_v39 }
 0x9b2   :  { %3834 = vmatprep.mubr.msk.f32.mxu0 %vm1917_vm6, %v3823_v32 }
 0x9b3   :  { %3989 = vmatpush3.bf16.xpose.msk.msra.mxu1 %vm5366_vm2, %v3987_v58  ;;  %3862 = vmatprep.subr.bf16.mxu0 %v3987_v58 }
 0x9b4   :  { %3863 = vmatpush3.bf16.msra.mxu0 %v3987_v58  ;;  %3990 = vmatprep.subr.bf16.mxu1 %v4327_v56 }
 0x9b5   :  { %v3827_v44 = vpop.f32.mrb[40].mxu1  ;;  %3835 = vmatmul.mubr.msk.f32.gmra.mrb[46].mxu0 %vm1917_vm6, %v3824_v50  ;;  %3864 = vmatprep.subr.bf16.mxu0 %v3991_v22 }
 0x9b6   :  { %v2644_v5 = vpop.f32.mrb[41].mxu1 }
 0x9b7   :  { %v3828_v28 = vpop.f32.mrb[42].mxu1  ;;  %3837 = vmatprep.mubr.msk.f32.mxu0 %vm1917_vm6, %v2644_v5 }
 0x9b8   :  { %v3999_v61 = vpack.c.bf16 %v3828_v28, %v3827_v44  ;;  %v2647_v42 = vpop.f32.mrb[43].mxu1  ;;  %3865 = vmatpush3.bf16.msra.mxu0 %v3991_v22 }
 0x9b9   :  { %v3995_v35 = vpack.c.bf16 %v2647_v42, %v2644_v5  ;;  %3838 = vmatmul.mubr.msk.f32.gmra.mrb[48].mxu0 %vm1917_vm6, %v2647_v42 }
 0x9ba   :  { %3840 = vmatprep.mubr.msk.f32.mxu0 %vm1917_vm6, %v3827_v44 }
 0x9bb   :  { %3993 = vmatpush3.bf16.xpose.msk.msra.mxu1 %vm5366_vm2, %v3991_v22  ;;  %3866 = vmatprep.subr.bf16.mxu0 %v3995_v35 }
 0x9bc   :  { %3867 = vmatpush3.bf16.msra.mxu0 %v3995_v35  ;;  %3994 = vmatprep.subr.bf16.mxu1 %v4327_v56 }
 0x9bd   :  { %3841 = vmatmul.mubr.msk.f32.gmra.mrb[50].mxu0 %vm1917_vm6, %v3828_v28  ;;  %3868 = vmatprep.subr.bf16.mxu0 %v3999_v61 }
 0x9c0   :  { %3869 = vmatpush3.bf16.msra.mxu0 %v3999_v61 }
 0x9c3   :  { %3997 = vmatpush3.bf16.xpose.msk.msra.mxu1 %vm5366_vm2, %v3995_v35 }
 0x9c4   :  { %3998 = vmatprep.subr.bf16.mxu1 %v4327_v56 }
 0x9c8   :  { %v2547_v30 = vpop.f32.mrb[42].mxu0 }
 0x9c9   :  { %v3816_v14 = vpop.f32.mrb[43].mxu0  ;;  %4220 = vrsqrt.f32 %v2547_v30  ;;  %vm2553_vm4 = vcmp.eq.f32.partialorder %v2547_v30, inf  ;;  %v2556_v11 = vand.u32 2147483648, %v2547_v30  ;;  %vm2555_vm5 = vcmp.eq.f32.partialorder %v2547_v30, 0.0 }
 0x9cb   :  { %4001 = vmatpush3.bf16.xpose.msk.msra.mxu1 %vm5366_vm2, %v3999_v61 }
 0x9d2   :  { %3860 = vmatmul.mubr.msk.f32.vlgmr.msra.gmra.mrb[34].mxu1 %vm1917_vm6, %v2804_v9 }
 0x9d3   :  { %v4221_v33 = vpop.eup %4220 }
 0x9d4   :  { %v2552_v1 = vmul.f32 %v4221_v33, %v2547_v30 }
 0x9d6   :  { %v2554_v55 = vsel %vm2553_vm4, %v2547_v30, %v2552_v1 }
 0x9d7   :  { %v2557_v41 = vsel %vm2555_vm5, %v2556_v11, %v2554_v55 }
 0x9d8   :  { %2558 = vst.msk [vmem:[#allocation4] sm:$0x1] %vm692_vm8, %v2557_v41  ;;  %vm5509_vm8 = vcmp.gt.f32.partialorder %v4875_v27, 0.0 }
 0xa84   :  { %v3833_v0 = vpop.f32.mrb[44].mxu0 }
 0xa85   :  { %2904 = vperm.xlu1 %4056, %v3833_v0   ;;  %v2749_v56 = vpop.f32.mrb[45].mxu0 }
 0xa88   :  { %v3836_v36 = vpop.f32.mrb[46].mxu0 }
 0xa89   :  { %2899 = vperm.xlu1 %4056, %v2749_v56   ;;  %v2759_v43 = vpop.f32.mrb[47].mxu0 }
 0xa8c   :  { %v3839_v31 = vpop.f32.mrb[48].mxu0 }
 0xa8d   :  { %2914 = vperm.xlu1 %4056, %v3836_v36   ;;  %v2769_v7 = vpop.f32.mrb[49].mxu0 }
 0xa90   :  { %v3842_v49 = vpop.f32.mrb[50].mxu0 }
 0xa91   :  { %2909 = vperm.xlu1 %4056, %v2759_v43   ;;  %v2779_v37 = vpop.f32.mrb[51].mxu0 }
 0xa95   :  { %2924 = vperm.xlu1 %4056, %v3839_v31  }
 0xa99   :  { %2919 = vperm.xlu1 %4056, %v2769_v7  }
 0xa9d   :  { %2929 = vperm.xlu1 %4056, %v2779_v37  }
 0xaa1   :  { %2934 = vperm.xlu1 %4056, %v3842_v49  }
 0xaa5   :  { %v2889_v24 = vpop.f32.mrb[34].mxu1 }
 0xaa6   :  { %v3861_v46 = vpop.f32.mrb[35].mxu1  ;;  %v2940_v29 = vrot.slane %v2889_v24, %v1076_v20 }
 0xb04   :  { %v2905_v54 = vpop.permute.xlu1 %2904 }
 0xb05   :  { %v2942_v59 = vadd.f32 %v2940_v29, %v2905_v54 }
 0xb07   :  { %v2950_v13 = vsub.f32 0.0, %v2942_v59  ;;  %v2958_v40 = vmul.f32 -0.2, %v2942_v59 }
 0xb08   :  { %v2900_v16 = vpop.permute.xlu1 %2899 }
 0xb09   :  { %v2966_v6 = vmin.f32 %v2950_v13, %v2958_v40  ;;  %v2941_v57 = vadd.f32 %v2940_v29, %v2900_v16 }
 0xb0b   :  { %v2975_v52 = vmul.f32 1.442695, %v2966_v6  ;;  %v2949_v51 = vsub.f32 0.0, %v2941_v57  ;;  %v2957_v63 = vmul.f32 -0.2, %v2941_v57 }
 0xb0c   :  { %v2915_v25 = vpop.permute.xlu1 %2914 }
 0xb0d   :  { %4222 = vpow2.f32 %v2975_v52  ;;  %v2965_v4 = vmin.f32 %v2949_v51, %v2957_v63  ;;  %v2944_v3 = vadd.f32 %v2940_v29, %v2915_v25 }
 0xb0f   :  { %v2973_v10 = vmul.f32 1.442695, %v2965_v4  ;;  %v2952_v26 = vsub.f32 0.0, %v2944_v3  ;;  %v2960_v23 = vmul.f32 -0.2, %v2944_v3 }
 0xb10   :  { %v2910_v47 = vpop.permute.xlu1 %2909 }
 0xb11   :  { %4224 = vpow2.f32 %v2973_v10  ;;  %v2968_v19 = vmin.f32 %v2952_v26, %v2960_v23  ;;  %v2943_v20 = vadd.f32 %v2940_v29, %v2910_v47 }
 0xb13   :  { %v2979_v2 = vmul.f32 1.442695, %v2968_v19  ;;  %v2951_v34 = vsub.f32 0.0, %v2943_v20  ;;  %v2959_v38 = vmul.f32 -0.2, %v2943_v20 }
 0xb14   :  { %v2925_v53 = vpop.permute.xlu1 %2924 }
 0xb15   :  { %4226 = vpow2.f32 %v2979_v2  ;;  %v2967_v15 = vmin.f32 %v2951_v34, %v2959_v38  ;;  %v2946_v32 = vadd.f32 %v2940_v29, %v2925_v53 }
 0xb17   :  { %v4223_v8 = vpop.eup %4222  ;;  %v2977_v50 = vmul.f32 1.442695, %v2967_v15  ;;  %v2954_v22 = vsub.f32 0.0, %v2946_v32  ;;  %v2962_v39 = vmul.f32 -0.2, %v2946_v32 }
 0xb18   :  { %v2920_v45 = vpop.permute.xlu1 %2919  ;;  %v2990_v58 = vsel %vm81_vm9, %v4223_v8, 0.0  ;;  %vm5510_vm9 = vcmp.gt.f32.partialorder %v4911_v48, 0.0 }
 0xb19   :  { %4228 = vpow2.f32 %v2977_v50  ;;  %v2970_v44 = vmin.f32 %v2954_v22, %v2962_v39  ;;  %v2945_v5 = vadd.f32 %v2940_v29, %v2920_v45  ;;  %v3000_v28 = vsel %vm97_vm0, %v2990_v58, 0.0 }
 0xb1a   :  { %3001 = vadd.xlane.f32.xlu1 %v3000_v28 }
 0xb1b   :  { %v4225_v61 = vpop.eup %4224  ;;  %v2983_v42 = vmul.f32 1.442695, %v2970_v44  ;;  %v2953_v35 = vsub.f32 0.0, %v2945_v5  ;;  %v2961_v30 = vmul.f32 -0.2, %v2945_v5 }
 0xb1c   :  { %v2930_v14 = vpop.permute.xlu1 %2929  ;;  %v2989_v9 = vsel %vm80_vm11, %v4225_v61, 0.0 }
 0xb1d   :  { %4230 = vpow2.f32 %v2983_v42  ;;  %v2969_v33 = vmin.f32 %v2953_v35, %v2961_v30  ;;  %v2947_v1 = vadd.f32 %v2940_v29, %v2930_v14  ;;  %v2997_v60 = vsel %vm97_vm0, %v2989_v9, 0.0 }
 0xb1e   :  { %v3029_v11 = vpack.c.bf16 %v2990_v58, %v2989_v9  ;;  %2998 = vadd.xlane.f32.xlu0 %v2997_v60 }
 0xb1f   :  { %v4227_v55 = vpop.eup %4226  ;;  %v2981_v41 = vmul.f32 1.442695, %v2969_v33  ;;  %v2955_v0 = vsub.f32 0.0, %v2947_v1  ;;  %v2963_v56 = vmul.f32 -0.2, %v2947_v1 }
 0xb20   :  { %3870 = vmatprep.mubr.msk.bf16.mxu0 %vm97_vm0, %v3029_v11  ;;  %v2935_v36 = vpop.permute.xlu1 %2934  ;;  %v2992_v43 = vsel %vm83_vm12, %v4227_v55, 0.0 }
 0xb21   :  { %4232 = vpow2.f32 %v2981_v41  ;;  %v2971_v18 = vmin.f32 %v2955_v0, %v2963_v56  ;;  %v2948_v31 = vadd.f32 %v2940_v29, %v2935_v36  ;;  %v3006_v7 = vsel %vm97_vm0, %v2992_v43, 0.0 }
 0xb22   :  { %3007 = vadd.xlane.f32.xlu1 %v3006_v7 }
 0xb23   :  { %v4229_v49 = vpop.eup %4228  ;;  %v2985_v37 = vmul.f32 1.442695, %v2971_v18  ;;  %v2956_v24 = vsub.f32 0.0, %v2948_v31  ;;  %v2964_v46 = vmul.f32 -0.2, %v2948_v31 }
 0xb24   :  { %v2991_v54 = vsel %vm82_vm10, %v4229_v49, 0.0  ;;  %vm5511_vm10 = vcmp.gt.f32.partialorder %v4916_v17, 0.0 }
 0xb25   :  { %4234 = vpow2.f32 %v2985_v37  ;;  %v2972_v59 = vmin.f32 %v2956_v24, %v2964_v46  ;;  %v3003_v13 = vsel %vm97_vm0, %v2991_v54, 0.0  ;;  %v3030_v40 = vpack.c.bf16 %v2992_v43, %v2991_v54 }
 0xb26   :  { %3004 = vadd.xlane.f32.xlu1 %v3003_v13 }
 0xb27   :  { %v4231_v12 = vpop.eup %4230  ;;  %v2987_v16 = vmul.f32 1.442695, %v2972_v59  ;;  %3871 = vmatmul.mubr.msk.bf16.vlgmr.msra.gmra.mrb[52].mxu0 %vm97_vm0, %v3030_v40 }
 0xb28   :  { %v2994_v29 = vsel %vm85_vm13, %v4231_v12, 0.0 }
 0xb29   :  { %4236 = vpow2.f32 %v2987_v16  ;;  %v3012_v6 = vsel %vm97_vm0, %v2994_v29, 0.0 }
 0xb2a   :  { %3013 = vadd.xlane.f32.xlu1 %v3012_v6 }
 0xb2b   :  { %v4233_v57 = vpop.eup %4232 }
 0xb2c   :  { %v2993_v62 = vsel %vm5509_vm8, %v4233_v57, 0.0 }
 0xb2d   :  { %v3009_v52 = vsel %vm97_vm0, %v2993_v62, 0.0  ;;  %v3031_v51 = vpack.c.bf16 %v2994_v29, %v2993_v62 }
 0xb2e   :  { %3010 = vadd.xlane.f32.xlu0 %v3009_v52 }
 0xb2f   :  { %v4235_v63 = vpop.eup %4234  ;;  %3874 = vmatprep.mubr.msk.bf16.mxu0 %vm97_vm0, %v3031_v51 }
 0xb30   :  { %v2995_v25 = vsel %vm5510_vm9, %v4235_v63, 0.0 }
 0xb31   :  { %v3015_v21 = vsel %vm97_vm0, %v2995_v25, 0.0 }
 0xb32   :  { %3016 = vadd.xlane.f32.xlu0 %v3015_v21 }
 0xb33   :  { %v4237_v4 = vpop.eup %4236 }
 0xb34   :  { %v2996_v3 = vsel %vm5511_vm10, %v4237_v4, 0.0 }
 0xb35   :  { %v3032_v10 = vpack.c.bf16 %v2996_v3, %v2995_v25  ;;  %v3018_v27 = vsel %vm97_vm0, %v2996_v3, 0.0 }
 0xb36   :  { %3019 = vadd.xlane.f32.xlu1 %v3018_v27 }
 0xb37   :  { %3875 = vmatmul.mubr.msk.bf16.gmra.mrb[56].mxu0 %vm97_vm0, %v3032_v10 }
 0xb38   :  { %4289 = shalt.err (!%p4286_p4)
}
 0xb39   :  { %s4290_s18 = scalar_lea.hbm %s5492_s16, 16 }
 0xb3a   :  { %p4291_p5 = scmp.ne.s32.totalorder %s5492_s16, %s4290_s18  ;;  %p4294_p6 = scmp.lt.u32.totalorder %s4290_s18, %s5492_s16 }
 0xb3c   :  { %p4296_p7 = pnand %p4294_p6, %p4291_p5 }
 0xb3e   :  { %4299 = shalt.err (!%p4296_p7)
}
 0xb3f   :  { %3185 = dma.vmem_to_hbm [thread:$0]  %s3183_s14, 16, %s5492_s16, [#allocation3]  }
 0xb40   :  { %s4300_s9 = scalar_lea.vmem %s3193_s29, 16  ;;  %s4304_s21 = scalar_lea.vmem %s3193_s29, 32 }
 0xb41   :  { %p4301_p8 = scmp.ne.s32.totalorder %s3193_s29, %s4300_s9  ;;  %p4305_p9 = scmp.lt.s32.totalorder %s3193_s29, %s3193_s29 }
 0xb42   :  { %p4306_p10 = scmp.lt.s32.totalorder %s4304_s21, %s4300_s9 }
 0xb44   :  { %p4307_p11 = por %p4306_p10, %p4305_p9 }
 0xb46   :  { %p4308_p12 = pnand %p4307_p11, %p4301_p8 }
 0xb48   :  { %4311 = shalt.err (!%p4308_p12)
}
 0xb49   :  { %s4312_s10 = scalar_lea.hbm %s5493_s17, 16 }
 0xb4a   :  { %p4313_p13 = scmp.ne.s32.totalorder %s5493_s17, %s4312_s10  ;;  %p4316_p0 = scmp.lt.u32.totalorder %s4312_s10, %s5493_s17 }
 0xb4c   :  { %p4318_p1 = pnand %p4316_p0, %p4313_p13 }
 0xb4e   :  { %4321 = shalt.err (!%p4318_p1)
}
 0xb4f   :  { %3195 = dma.vmem_to_hbm [thread:$0]  %s3193_s29, 16, %s5493_s17, [#allocation5]  }
 0xba7   :  { %v3002_v48 = vpop.xlane.xlu1 %3001 }
 0xbab   :  { %v2999_v23 = vpop.xlane.xlu0 %2998 }
 0xbaf   :  { %v3008_v17 = vpop.xlane.xlu1 %3007 }
 0xbb3   :  { %v3005_v26 = vpop.xlane.xlu1 %3004 }
 0xbb4   :  { %4238 = vrcp.f32 %v3005_v26 }
 0xbb5   :  { %4240 = vrcp.f32 %v2999_v23 }
 0xbb6   :  { %4242 = vrcp.f32 %v3008_v17 }
 0xbb7   :  { %4244 = vrcp.f32 %v3002_v48  ;;  %v3014_v19 = vpop.xlane.xlu1 %3013 }
 0xbbb   :  { %v3011_v47 = vpop.xlane.xlu0 %3010 }
 0xbbc   :  { %4246 = vrcp.f32 %v3011_v47 }
 0xbbe   :  { %v4239_v20 = vpop.eup %4238 }
 0xbbf   :  { %v4241_v34 = vpop.eup %4240  ;;  %v3017_v32 = vpop.xlane.xlu0 %3016 }
 0xbc0   :  { %v4243_v15 = vpop.eup %4242  ;;  %4248 = vrcp.f32 %v3017_v32 }
 0xbc1   :  { %v4245_v22 = vpop.eup %4244 }
 0xbc3   :  { %v3020_v39 = vpop.xlane.xlu1 %3019 }
 0xbc4   :  { %4250 = vrcp.f32 %v3020_v39 }
 0xbc6   :  { %v4247_v33 = vpop.eup %4246 }
 0xbca   :  { %v4249_v1 = vpop.eup %4248 }
 0xbce   :  { %v4251_v60 = vpop.eup %4250 }
 0xbfa   :  { %v3872_v2 = vpop.f32.mrb[52].mxu0 }
 0xbfb   :  { %v3112_v38 = vmul.f32 %v4239_v20, %v3872_v2  ;;  %v3079_v53 = vpop.f32.mrb[53].mxu0 }
 0xbfc   :  { %v3110_v8 = vmul.f32 %v4241_v34, %v3079_v53  ;;  %v3873_v50 = vpop.f32.mrb[54].mxu0 }
 0xbfd   :  { %v3128_v45 = vmin.f32 %v3112_v38, 0.0  ;;  %v3113_v58 = vmul.f32 %v4243_v15, %v3873_v50  ;;  %v3082_v44 = vpop.f32.mrb[55].mxu0  ;;  %vm3120_vm0 = vcmp.gt.f32.partialorder %v3112_v38, 0.0 }
 0xbfe   :  { %v3126_v5 = vmin.f32 %v3110_v8, 0.0  ;;  %v3111_v28 = vmul.f32 %v4245_v22, %v3082_v44  ;;  %vm3118_vm11 = vcmp.gt.f32.partialorder %v3110_v8, 0.0 }
 0xbff   :  { %v3138_v61 = vmul.f32 1.442695, %v3128_v45  ;;  %v3129_v42 = vmin.f32 %v3113_v58, 0.0  ;;  %vm3121_vm12 = vcmp.gt.f32.partialorder %v3113_v58, 0.0 }
 0xc00   :  { %v3134_v35 = vmul.f32 1.442695, %v3126_v5  ;;  %v3127_v30 = vmin.f32 %v3111_v28, 0.0  ;;  %vm3119_vm13 = vcmp.gt.f32.partialorder %v3111_v28, 0.0 }
 0xc01   :  { %4252 = vpow2.f32 %v3138_v61  ;;  %v3140_v14 = vmul.f32 1.442695, %v3129_v42 }
 0xc02   :  { %4254 = vpow2.f32 %v3134_v35  ;;  %v3136_v9 = vmul.f32 1.442695, %v3127_v30 }
 0xc03   :  { %4256 = vpow2.f32 %v3140_v14 }
 0xc04   :  { %4258 = vpow2.f32 %v3136_v9 }
 0xc05   :  { %4260 = vrcp.f32 %v3014_v19 }
 0xc0a   :  { %v3876_v11 = vpop.f32.mrb[56].mxu0 }
 0xc0b   :  { %v4253_v55 = vpop.eup %4252  ;;  %v3116_v41 = vmul.f32 %v4249_v1, %v3876_v11  ;;  %v3095_v0 = vpop.f32.mrb[57].mxu0 }
 0xc0c   :  { %v4255_v56 = vpop.eup %4254  ;;  %v3366_v36 = vadd.f32 -1.0, %v4253_v55  ;;  %v3114_v43 = vmul.f32 %v4247_v33, %v3095_v0  ;;  %v3877_v18 = vpop.f32.mrb[58].mxu0 }
 0xc0d   :  { %v4257_v31 = vpop.eup %4256  ;;  %v3364_v7 = vadd.f32 -1.0, %v4255_v56  ;;  %v3132_v49 = vmin.f32 %v3116_v41, 0.0  ;;  %v3117_v37 = vmul.f32 %v4251_v60, %v3877_v18  ;;  %v3098_v24 = vpop.f32.mrb[59].mxu0  ;;  %vm3124_vm1 = vcmp.gt.f32.partialorder %v3116_v41, 0.0 }
 0xc0e   :  { %v4259_v46 = vpop.eup %4258  ;;  %v3160_v54 = vsel %vm3120_vm0, %v3112_v38, %v3366_v36  ;;  %v3367_v59 = vadd.f32 -1.0, %v4257_v31  ;;  %v3130_v13 = vmin.f32 %v3114_v43, 0.0  ;;  %vm3122_vm15 = vcmp.gt.f32.partialorder %v3114_v43, 0.0 }
 0xc0f   :  { %v4261_v40 = vpop.eup %4260  ;;  %3168 = vst.msk [vmem:[%s5491_s15 + $0x10] sm:$0xff] %vm1917_vm6, %v3160_v54  ;;  %v3158_v12 = vsel %vm3118_vm11, %v3110_v8, %v3364_v7  ;;  %v3365_v16 = vadd.f32 -1.0, %v4259_v46  ;;  %v3146_v29 = vmul.f32 1.442695, %v3132_v49  ;;  %v3133_v62 = vmin.f32 %v3117_v37, 0.0 }
 0xc10   :  { %3166 = vst.msk [vmem:[%s5491_s15] sm:$0xff] %vm1917_vm6, %v3158_v12  ;;  %v3161_v6 = vsel %vm3121_vm12, %v3113_v58, %v3367_v59  ;;  %v3142_v57 = vmul.f32 1.442695, %v3130_v13  ;;  %v3115_v52 = vmul.f32 %v4261_v40, %v3098_v24  ;;  %vm3125_vm14 = vcmp.gt.f32.partialorder %v3117_v37, 0.0 }
 0xc11   :  { %3169 = vst.msk [vmem:[%s5491_s15 + $0x18] sm:$0xff] %vm1917_vm6, %v3161_v6  ;;  %v3159_v51 = vsel %vm3119_vm13, %v3111_v28, %v3365_v16  ;;  %4262 = vpow2.f32 %v3146_v29  ;;  %v3148_v63 = vmul.f32 1.442695, %v3133_v62 }
 0xc12   :  { %3167 = vst.msk [vmem:[%s5491_s15 + $0x8] sm:$0xff] %vm1917_vm6, %v3159_v51  ;;  %4264 = vpow2.f32 %v3142_v57  ;;  %v3131_v25 = vmin.f32 %v3115_v52, 0.0  ;;  %vm3123_vm7 = vcmp.gt.f32.partialorder %v3115_v52, 0.0 }
 0xc13   :  { %4266 = vpow2.f32 %v3148_v63 }
 0xc14   :  { %v3144_v21 = vmul.f32 1.442695, %v3131_v25 }
 0xc16   :  { %4268 = vpow2.f32 %v3144_v21 }
 0xc1b   :  { %v4263_v4 = vpop.eup %4262 }
 0xc1c   :  { %v4265_v3 = vpop.eup %4264  ;;  %v3370_v10 = vadd.f32 -1.0, %v4263_v4 }
 0xc1d   :  { %v3368_v27 = vadd.f32 -1.0, %v4265_v3  ;;  %v4267_v48 = vpop.eup %4266 }
 0xc1e   :  { %v3164_v17 = vsel %vm3124_vm1, %v3116_v41, %v3370_v10  ;;  %v3371_v23 = vadd.f32 -1.0, %v4267_v48 }
 0xc1f   :  { %3172 = vst.msk [vmem:[%s5491_s15 + $0x30] sm:$0xff] %vm1917_vm6, %v3164_v17  ;;  %v3162_v26 = vsel %vm3122_vm15, %v3114_v43, %v3368_v27 }
 0xc20   :  { %v4269_v47 = vpop.eup %4268  ;;  %3170 = vst.msk [vmem:[%s5491_s15 + $0x20] sm:$0xff] %vm1917_vm6, %v3162_v26  ;;  %v3165_v19 = vsel %vm3125_vm14, %v3117_v37, %v3371_v23 }
 0xc21   :  { %v3369_v20 = vadd.f32 -1.0, %v4269_v47  ;;  %3173 = vst.msk [vmem:[%s5491_s15 + $0x38] sm:$0xff] %vm1917_vm6, %v3165_v19 }
 0xc23   :  { %v3163_v2 = vsel %vm3123_vm7, %v3115_v52, %v3369_v20 }
 0xc24   :  { %3171 = vst.msk [vmem:[%s5491_s15 + $0x28] sm:$0xff] %vm1917_vm6, %v3163_v2 }
 0xc25   :  { %4322 = dma.done.wait [#allocation3], 16  }
 0xc26   :  { %4323 = vsyncadd [#allocation3], 4294967280 }
 0xc27   :  { %4324 = dma.done.wait [#allocation5], 16  }
 0xc28   :  { %4325 = vsyncadd [#allocation5], 4294967280 }
 0xc29   :  { %3204 = vsyncpa [#allocation3], 1 }
 0xc2a   :  { %3205 = vsyncpa [#allocation5], 1 }

</bundles_post_ra>
